<compile_context>
chip_gen: v7x
topology: tpu7x:2x2x1
jax: 0.10.0
libtpu: 0.0.40
codegen_flags: <defaults>
</compile_context>

<pallas_src>
import jax
import jax.numpy as jnp
from jax import lax
from jax.experimental import pallas as pl
from jax.experimental.pallas import tpu as pltpu


def _gru2_kernel(seqx_ref, deepx_ref, len_ref, wih1s_ref, wih1d_ref, b1_ref,
                 whh1_ref, bhh1n_ref, w2t_ref, w2b_ref, b2_ref, o_ref):
    """Whole 2-layer GRU (input projection + recurrence) in one gridless kernel.

    seqx_ref : (T*B, Fs)  time-major seq features, flattened (free wrapper reshape)
    deepx_ref: (B, Fd)    deepnet features (time-invariant)
    len_ref  : (B, 1)     int32 sequence lengths
    wih1s/d  : (Fs,3H)/(Fd,3H)  layer-1 input weight, split seq/deep
    b1       : (1, 3H)    bih1 + [bhh1_r | bhh1_z | 0]  (r/z recurrent bias pre-folded)
    whh1     : (H, 3H)    layer-1 recurrent weight (transposed, no bias)
    bhh1n    : (1, H)     layer-1 recurrent n-gate bias (must stay inside r*(.))
    w2t/w2b  : (H, 4H)    fused layer-2 gates: g2 = h1@w2t + h2@w2b + b2
                          columns = [(gi+gh)_r | (gi+gh)_z | gi_n | gh_n]
    b2       : (1, 4H)
    o_ref    : (B, T*H)   lane-dense output; column block t*H:(t+1)*H is step t
    """
    TB, _ = seqx_ref.shape
    B = deepx_ref.shape[0]
    T = TB // B
    H = whh1_ref.shape[0]

    whh1 = whh1_ref[...]
    w2t = w2t_ref[...]
    w2b = w2b_ref[...]

    # ---- fused layer-1 input projection: one MXU matmul for all T steps -------------
    gi_seq = jnp.dot(seqx_ref[...], wih1s_ref[...],
                     preferred_element_type=jnp.float32)                    # (T*B, 3H)
    gd = (jnp.dot(deepx_ref[...], wih1d_ref[...],
                  preferred_element_type=jnp.float32)
          + jnp.broadcast_to(b1_ref[...], (B, 3 * H)))                      # (B, 3H)

    # Hoisted broadcasts (JAX does not CSE broadcast_in_dim inside the loop).
    bhh1n_b = jnp.broadcast_to(bhh1n_ref[...], (B, H))
    b2_b = jnp.broadcast_to(b2_ref[...], (B, 4 * H))
    length = len_ref[...]                                                   # (B, 1) int32

    h1 = jnp.zeros((B, H), jnp.float32)
    h2 = jnp.zeros((B, H), jnp.float32)
    outs = []

    # T is small & compile-time fixed -> static unroll; the recurrence is inherently serial.
    # TODO(synk): for large/variable T switch to lax.fori_loop with a VMEM output scratch.
    for t in range(T):
        m = length > t                                   # (B,1) bool: t < length[b]
        gi1 = gi_seq[t * B:(t + 1) * B, :] + gd          # (B, 3H)

        # ---- layer 1: only the recurrent matmul stays on the serialized path ----
        gh1 = jnp.dot(h1, whh1, preferred_element_type=jnp.float32)
        rz1 = jax.nn.sigmoid(gi1[:, :2 * H] + gh1[:, :2 * H])   # r|z, one sigmoid
        r1, z1 = rz1[:, :H], rz1[:, H:]
        n1 = jnp.tanh(gi1[:, 2 * H:] + r1 * (gh1[:, 2 * H:] + bhh1n_b))
        h1 = jnp.where(m, n1 + z1 * (h1 - n1), h1)       # single vsel state hold

        # TODO(synk): nn.GRU(dropout=0.3) between layers is a no-op in eval mode; not modeled.

        # ---- layer 2: two split MXU dots (no per-step lane concat) ----
        g2 = (jnp.dot(h1, w2t, preferred_element_type=jnp.float32)
              + jnp.dot(h2, w2b, preferred_element_type=jnp.float32) + b2_b)  # (B, 4H)
        rz2 = jax.nn.sigmoid(g2[:, :2 * H])
        r2, z2 = rz2[:, :H], rz2[:, H:]
        n2 = jnp.tanh(g2[:, 2 * H:3 * H] + r2 * g2[:, 3 * H:])
        h2_cand = n2 + z2 * (h2 - n2)
        h2 = jnp.where(m, h2_cand, h2)
        outs.append(jnp.where(m, h2_cand, 0.0))          # pad_packed_sequence zero-pads

    # Single lane-dense store: (B, T*H) = (4, 256); wrapper reshapes/transposes to (T,B,H).
    o_ref[...] = jnp.concatenate(outs, axis=-1)


def prepare_params(params, in_feature_s):
    """One-time parameter preprocessing (NOT re-run per forward call)."""
    Fs = in_feature_s
    H = params["whh1"].shape[0]
    wih1 = params["wih1"]
    bih1, bhh1 = params["bih1"], params["bhh1"]
    bih2, bhh2 = params["bih2"], params["bhh2"]
    wih2, whh2 = params["wih2"], params["whh2"]
    zH = jnp.zeros((H, H), jnp.float32)
    prepared = {
        "wih1_s": wih1[:Fs],                                               # (Fs, 3H)
        "wih1_d": wih1[Fs:],                                               # (Fd, 3H)
        # bih1 + bhh1 for the r/z gates pre-folded; bhh1_n must stay inside r*(.)
        "b1": bih1 + jnp.concatenate(
            [bhh1[:, :2 * H], jnp.zeros((1, H), jnp.float32)], axis=1),    # (1, 3H)
        "bhh1_n": bhh1[:, 2 * H:],                                         # (1, H)
        "whh1": params["whh1"],                                            # (H, 3H)
        # layer-2 fused gates, split per operand: g2 = h1@w2_top + h2@w2_bot + b2
        "w2_top": jnp.concatenate([wih2[:, :2 * H], wih2[:, 2 * H:], zH], axis=1),  # (H,4H)
        "w2_bot": jnp.concatenate([whh2[:, :2 * H], zH, whh2[:, 2 * H:]], axis=1),  # (H,4H)
        "b2": jnp.concatenate([bih2[:, :2 * H] + bhh2[:, :2 * H],
                               bih2[:, 2 * H:], bhh2[:, 2 * H:]], axis=1),          # (1,4H)
    }
    return jax.block_until_ready(prepared)


@jax.jit
def seqnet_forward(seq_x, deep_x, length, prepared):
    """Pallas implementation of seqnet.forward (eval mode). Returns (T, B, H);
    torch.chunk along time is a consumer-side view (no extra device ops here)."""
    T, B, Fs = seq_x.shape
    H = prepared["whh1"].shape[0]

    seq_x2d = seq_x.astype(jnp.float32).reshape(T * B, Fs)   # free row-major reshape
    deep_x = deep_x.astype(jnp.float32)
    length_v = length.astype(jnp.int32).reshape(B, 1)

    in_specs = [pl.BlockSpec(memory_space=pltpu.MemorySpace.VMEM) for _ in range(11)]
    out = pl.pallas_call(
        _gru2_kernel,
        out_shape=jax.ShapeDtypeStruct((B, T * H), jnp.float32),
        in_specs=in_specs,
        out_specs=pl.BlockSpec(memory_space=pltpu.MemorySpace.VMEM),
    )(seq_x2d, deep_x, length_v,
      prepared["wih1_s"], prepared["wih1_d"], prepared["b1"],
      prepared["whh1"], prepared["bhh1_n"],
      prepared["w2_top"], prepared["w2_bot"], prepared["b2"])

    # (B, T*H) -> (T, B, H): tiny (4 KB) wrapper-side relayout.
    return out.reshape(B, T, H).transpose(1, 0, 2)


def init_params(key, in_feature_s, in_feature_d, hidden):
    """Deterministic init matching nn.GRU shapes; uniform(-1/sqrt(H), 1/sqrt(H))."""
    Fin = in_feature_s + in_feature_d
    H = hidden
    k = 1.0 / jnp.sqrt(jnp.float32(H))
    keys = jax.random.split(key, 8)

    def u(kk, shape):
        return jax.random.uniform(kk, shape, jnp.float32, -k, k)

    # Weights stored already transposed for row-major matmul:
    #   torch weight_ih_l0 is (3H, Fin) -> here (Fin, 3H), etc.
    return {
        "wih1": u(keys[0], (Fin, 3 * H)),
        "whh1": u(keys[1], (H, 3 * H)),
        "bih1": u(keys[2], (1, 3 * H)),
        "bhh1": u(keys[3], (1, 3 * H)),
        "wih2": u(keys[4], (H, 3 * H)),
        "whh2": u(keys[5], (H, 3 * H)),
        "bih2": u(keys[6], (1, 3 * H)),
        "bhh2": u(keys[7], (1, 3 * H)),
    }


def _ref_forward(seq_x, deep_x, length, params):
    """Pure-JAX reference (lax.scan) with identical semantics."""
    T, B, Fs = seq_x.shape
    Fd = deep_x.shape[-1]
    H = params["whh1"].shape[0]
    x = jnp.concatenate(
        [seq_x, jnp.broadcast_to(deep_x[None, :, :], (T, B, Fd))], axis=-1)

    def cell(x_in, h, wih, whh, bih, bhh):
        gi = x_in @ wih + bih
        gh = h @ whh + bhh
        r = jax.nn.sigmoid(gi[:, :H] + gh[:, :H])
        z = jax.nn.sigmoid(gi[:, H:2 * H] + gh[:, H:2 * H])
        n = jnp.tanh(gi[:, 2 * H:] + r * gh[:, 2 * H:])
        return (1 - z) * n + z * h

    def step(carry, inp):
        h1, h2 = carry
        x_t, t = inp
        m = (length > t)[:, None]
        h1n = jnp.where(m, cell(x_t, h1, params["wih1"], params["whh1"],
                                params["bih1"], params["bhh1"]), h1)
        h2n = jnp.where(m, cell(h1n, h2, params["wih2"], params["whh2"],
                                params["bih2"], params["bhh2"]), h2)
        out = jnp.where(m, h2n, 0.0)
        return (h1n, h2n), out

    init = (jnp.zeros((B, H), jnp.float32), jnp.zeros((B, H), jnp.float32))
    _, outs = lax.scan(step, init, (x, jnp.arange(T)))
    return outs


if __name__ == "__main__":
    # seqnet(in_feature_s=8, hidden_unit_s=32, in_feature_d=16)
    in_feature_s, in_feature_d, hidden = 8, 16, 32
    T, B = 8, 4

    key = jax.random.PRNGKey(0)
    kp, k1, k2 = jax.random.split(key, 3)
    params = init_params(kp, in_feature_s, in_feature_d, hidden)
    prepared = prepare_params(params, in_feature_s)   # done once at setup

    seq_x = jax.random.normal(k1, (T, B, in_feature_s), jnp.float32)
    deep_x = jax.random.normal(k2, (B, in_feature_d), jnp.float32)
    length = jnp.array([8, 5, 8, 3], dtype=jnp.int32)

    out = seqnet_forward(seq_x, deep_x, length, prepared)
    out = jax.block_until_ready(out)

    ref = _ref_forward(seq_x, deep_x, length, params)
    assert out.shape == (T, B, hidden)
    assert jnp.allclose(out, ref, atol=1e-4, rtol=1e-4), "mismatch vs JAX reference"

    # torch.chunk equivalence is a consumer-side view of the single (T,B,H) result.
    chunks = tuple(out[t:t + 1] for t in range(T))
    assert len(chunks) == T and chunks[0].shape == (1, B, hidden)

    print("KERNEL_OK")
</pallas_src>

<mosaic_0001>
module attributes {stable_mosaic.version = 11 : i64} {
  func.func @_gru2_kernel(%arg0: memref<32x8xf32, #tpu.memory_space<vmem>>, %arg1: memref<4x16xf32, #tpu.memory_space<vmem>>, %arg2: memref<4x1xi32, #tpu.memory_space<vmem>>, %arg3: memref<8x96xf32, #tpu.memory_space<vmem>>, %arg4: memref<16x96xf32, #tpu.memory_space<vmem>>, %arg5: memref<1x96xf32, #tpu.memory_space<vmem>>, %arg6: memref<32x96xf32, #tpu.memory_space<vmem>>, %arg7: memref<1x32xf32, #tpu.memory_space<vmem>>, %arg8: memref<32x128xf32, #tpu.memory_space<vmem>>, %arg9: memref<32x128xf32, #tpu.memory_space<vmem>>, %arg10: memref<1x128xf32, #tpu.memory_space<vmem>>, %arg11: memref<4x256xf32, #tpu.memory_space<vmem>>) attributes {dimension_semantics = [], scalar_prefetch = 0 : i64, scratch_operands = 0 : i64, tpu.core_type = #tpu.core_type<tc>} {
    %c0 = arith.constant 0 : index
    %c0_0 = arith.constant 0 : index
    %0 = vector.load %arg6[%c0, %c0_0] : memref<32x96xf32, #tpu.memory_space<vmem>>, vector<32x96xf32>
    %c0_1 = arith.constant 0 : index
    %c0_2 = arith.constant 0 : index
    %1 = vector.load %arg8[%c0_1, %c0_2] : memref<32x128xf32, #tpu.memory_space<vmem>>, vector<32x128xf32>
    %c0_3 = arith.constant 0 : index
    %c0_4 = arith.constant 0 : index
    %2 = vector.load %arg9[%c0_3, %c0_4] : memref<32x128xf32, #tpu.memory_space<vmem>>, vector<32x128xf32>
    %c0_5 = arith.constant 0 : index
    %c0_6 = arith.constant 0 : index
    %3 = vector.load %arg0[%c0_5, %c0_6] : memref<32x8xf32, #tpu.memory_space<vmem>>, vector<32x8xf32>
    %c0_7 = arith.constant 0 : index
    %c0_8 = arith.constant 0 : index
    %4 = vector.load %arg3[%c0_7, %c0_8] : memref<8x96xf32, #tpu.memory_space<vmem>>, vector<8x96xf32>
    %cst = arith.constant dense<0.000000e+00> : vector<32x96xf32>
    %5 = tpu.matmul %3, %4, %cst {dimension_numbers = #tpu.dot_dimension_numbers<[1], [0], [0], [1], [0, 0, 1, 1], [], []>} : vector<32x8xf32>, vector<8x96xf32>, vector<32x96xf32> -> vector<32x96xf32>
    %c0_9 = arith.constant 0 : index
    %c0_10 = arith.constant 0 : index
    %6 = vector.load %arg1[%c0_9, %c0_10] : memref<4x16xf32, #tpu.memory_space<vmem>>, vector<4x16xf32>
    %c0_11 = arith.constant 0 : index
    %c0_12 = arith.constant 0 : index
    %7 = vector.load %arg4[%c0_11, %c0_12] : memref<16x96xf32, #tpu.memory_space<vmem>>, vector<16x96xf32>
    %cst_13 = arith.constant dense<0.000000e+00> : vector<4x96xf32>
    %8 = tpu.matmul %6, %7, %cst_13 {dimension_numbers = #tpu.dot_dimension_numbers<[1], [0], [0], [1], [0, 0, 1, 1], [], []>} : vector<4x16xf32>, vector<16x96xf32>, vector<4x96xf32> -> vector<4x96xf32>
    %c0_14 = arith.constant 0 : index
    %c0_15 = arith.constant 0 : index
    %9 = vector.load %arg5[%c0_14, %c0_15] : memref<1x96xf32, #tpu.memory_space<vmem>>, vector<1x96xf32>
    %10 = vector.shape_cast %9 : vector<1x96xf32> to vector<1x96xf32>
    %11 = vector.broadcast %10 : vector<1x96xf32> to vector<4x96xf32>
    %12 = arith.addf %8, %11 : vector<4x96xf32>
    %c0_16 = arith.constant 0 : index
    %c0_17 = arith.constant 0 : index
    %13 = vector.load %arg7[%c0_16, %c0_17] : memref<1x32xf32, #tpu.memory_space<vmem>>, vector<1x32xf32>
    %14 = vector.shape_cast %13 : vector<1x32xf32> to vector<1x32xf32>
    %15 = vector.broadcast %14 : vector<1x32xf32> to vector<4x32xf32>
    %c0_18 = arith.constant 0 : index
    %c0_19 = arith.constant 0 : index
    %16 = vector.load %arg10[%c0_18, %c0_19] : memref<1x128xf32, #tpu.memory_space<vmem>>, vector<1x128xf32>
    %17 = vector.shape_cast %16 : vector<1x128xf32> to vector<1x128xf32>
    %18 = vector.broadcast %17 : vector<1x128xf32> to vector<4x128xf32>
    %c0_20 = arith.constant 0 : index
    %c0_21 = arith.constant 0 : index
    %19 = vector.load %arg2[%c0_20, %c0_21] : memref<4x1xi32, #tpu.memory_space<vmem>>, vector<4x1xi32>
    %cst_22 = arith.constant 0.000000e+00 : f32
    %20 = vector.broadcast %cst_22 : f32 to vector<4x32xf32>
    %cst_23 = arith.constant 0.000000e+00 : f32
    %21 = vector.broadcast %cst_23 : f32 to vector<4x32xf32>
    %c0_i32 = arith.constant 0 : i32
    %22 = vector.broadcast %c0_i32 : i32 to vector<4x1xi32>
    %23 = arith.cmpi sgt, %19, %22 : vector<4x1xi32>
    %24 = vector.extract_strided_slice %5 {offsets = [0, 0], sizes = [4, 96], strides = [1, 1]} : vector<32x96xf32> to vector<4x96xf32>
    %25 = arith.addf %24, %12 : vector<4x96xf32>
    %cst_24 = arith.constant dense<0.000000e+00> : vector<4x96xf32>
    %26 = tpu.matmul %20, %0, %cst_24 {dimension_numbers = #tpu.dot_dimension_numbers<[1], [0], [0], [1], [0, 0, 1, 1], [], []>} : vector<4x32xf32>, vector<32x96xf32>, vector<4x96xf32> -> vector<4x96xf32>
    %27 = vector.extract_strided_slice %25 {offsets = [0, 0], sizes = [4, 64], strides = [1, 1]} : vector<4x96xf32> to vector<4x64xf32>
    %28 = vector.extract_strided_slice %26 {offsets = [0, 0], sizes = [4, 64], strides = [1, 1]} : vector<4x96xf32> to vector<4x64xf32>
    %29 = arith.addf %27, %28 : vector<4x64xf32>
    %30 = arith.negf %29 : vector<4x64xf32>
    %31 = math.exp %30 : vector<4x64xf32>
    %cst_25 = arith.constant 1.000000e+00 : f32
    %32 = vector.broadcast %cst_25 : f32 to vector<4x64xf32>
    %33 = arith.addf %32, %31 : vector<4x64xf32>
    %34 = arith.divf %32, %33 : vector<4x64xf32>
    %35 = vector.extract_strided_slice %34 {offsets = [0, 0], sizes = [4, 32], strides = [1, 1]} : vector<4x64xf32> to vector<4x32xf32>
    %36 = vector.extract_strided_slice %34 {offsets = [0, 32], sizes = [4, 32], strides = [1, 1]} : vector<4x64xf32> to vector<4x32xf32>
    %37 = vector.extract_strided_slice %25 {offsets = [0, 64], sizes = [4, 32], strides = [1, 1]} : vector<4x96xf32> to vector<4x32xf32>
    %38 = vector.extract_strided_slice %26 {offsets = [0, 64], sizes = [4, 32], strides = [1, 1]} : vector<4x96xf32> to vector<4x32xf32>
    %39 = arith.addf %38, %15 : vector<4x32xf32>
    %40 = arith.mulf %35, %39 : vector<4x32xf32>
    %41 = arith.addf %37, %40 : vector<4x32xf32>
    %42 = math.tanh %41 : vector<4x32xf32>
    %43 = arith.subf %20, %42 : vector<4x32xf32>
    %44 = arith.mulf %36, %43 : vector<4x32xf32>
    %45 = arith.addf %42, %44 : vector<4x32xf32>
    %46 = vector.shape_cast %23 : vector<4x1xi1> to vector<4x1xi1>
    %47 = vector.broadcast %46 : vector<4x1xi1> to vector<4x32xi1>
    %48 = arith.select %47, %45, %20 : vector<4x32xi1>, vector<4x32xf32>
    %cst_26 = arith.constant dense<0.000000e+00> : vector<4x128xf32>
    %49 = tpu.matmul %48, %1, %cst_26 {dimension_numbers = #tpu.dot_dimension_numbers<[1], [0], [0], [1], [0, 0, 1, 1], [], []>} : vector<4x32xf32>, vector<32x128xf32>, vector<4x128xf32> -> vector<4x128xf32>
    %cst_27 = arith.constant dense<0.000000e+00> : vector<4x128xf32>
    %50 = tpu.matmul %21, %2, %cst_27 {dimension_numbers = #tpu.dot_dimension_numbers<[1], [0], [0], [1], [0, 0, 1, 1], [], []>} : vector<4x32xf32>, vector<32x128xf32>, vector<4x128xf32> -> vector<4x128xf32>
    %51 = arith.addf %49, %50 : vector<4x128xf32>
    %52 = arith.addf %51, %18 : vector<4x128xf32>
    %53 = vector.extract_strided_slice %52 {offsets = [0, 0], sizes = [4, 64], strides = [1, 1]} : vector<4x128xf32> to vector<4x64xf32>
    %54 = arith.negf %53 : vector<4x64xf32>
    %55 = math.exp %54 : vector<4x64xf32>
    %cst_28 = arith.constant 1.000000e+00 : f32
    %56 = vector.broadcast %cst_28 : f32 to vector<4x64xf32>
    %57 = arith.addf %56, %55 : vector<4x64xf32>
    %58 = arith.divf %56, %57 : vector<4x64xf32>
    %59 = vector.extract_strided_slice %58 {offsets = [0, 0], sizes = [4, 32], strides = [1, 1]} : vector<4x64xf32> to vector<4x32xf32>
    %60 = vector.extract_strided_slice %58 {offsets = [0, 32], sizes = [4, 32], strides = [1, 1]} : vector<4x64xf32> to vector<4x32xf32>
    %61 = vector.extract_strided_slice %52 {offsets = [0, 64], sizes = [4, 32], strides = [1, 1]} : vector<4x128xf32> to vector<4x32xf32>
    %62 = vector.extract_strided_slice %52 {offsets = [0, 96], sizes = [4, 32], strides = [1, 1]} : vector<4x128xf32> to vector<4x32xf32>
    %63 = arith.mulf %59, %62 : vector<4x32xf32>
    %64 = arith.addf %61, %63 : vector<4x32xf32>
    %65 = math.tanh %64 : vector<4x32xf32>
    %66 = arith.subf %21, %65 : vector<4x32xf32>
    %67 = arith.mulf %60, %66 : vector<4x32xf32>
    %68 = arith.addf %65, %67 : vector<4x32xf32>
    %69 = vector.shape_cast %23 : vector<4x1xi1> to vector<4x1xi1>
    %70 = vector.broadcast %69 : vector<4x1xi1> to vector<4x32xi1>
    %71 = arith.select %70, %68, %21 : vector<4x32xi1>, vector<4x32xf32>
    %cst_29 = arith.constant 0.000000e+00 : f32
    %72 = vector.shape_cast %23 : vector<4x1xi1> to vector<4x1xi1>
    %73 = vector.broadcast %72 : vector<4x1xi1> to vector<4x32xi1>
    %74 = vector.broadcast %cst_29 : f32 to vector<4x32xf32>
    %75 = arith.select %73, %68, %74 : vector<4x32xi1>, vector<4x32xf32>
    %c1_i32 = arith.constant 1 : i32
    %76 = vector.broadcast %c1_i32 : i32 to vector<4x1xi32>
    %77 = arith.cmpi sgt, %19, %76 : vector<4x1xi32>
    %78 = vector.extract_strided_slice %5 {offsets = [4, 0], sizes = [4, 96], strides = [1, 1]} : vector<32x96xf32> to vector<4x96xf32>
    %79 = arith.addf %78, %12 : vector<4x96xf32>
    %cst_30 = arith.constant dense<0.000000e+00> : vector<4x96xf32>
    %80 = tpu.matmul %48, %0, %cst_30 {dimension_numbers = #tpu.dot_dimension_numbers<[1], [0], [0], [1], [0, 0, 1, 1], [], []>} : vector<4x32xf32>, vector<32x96xf32>, vector<4x96xf32> -> vector<4x96xf32>
    %81 = vector.extract_strided_slice %79 {offsets = [0, 0], sizes = [4, 64], strides = [1, 1]} : vector<4x96xf32> to vector<4x64xf32>
    %82 = vector.extract_strided_slice %80 {offsets = [0, 0], sizes = [4, 64], strides = [1, 1]} : vector<4x96xf32> to vector<4x64xf32>
    %83 = arith.addf %81, %82 : vector<4x64xf32>
    %84 = arith.negf %83 : vector<4x64xf32>
    %85 = math.exp %84 : vector<4x64xf32>
    %cst_31 = arith.constant 1.000000e+00 : f32
    %86 = vector.broadcast %cst_31 : f32 to vector<4x64xf32>
    %87 = arith.addf %86, %85 : vector<4x64xf32>
    %88 = arith.divf %86, %87 : vector<4x64xf32>
    %89 = vector.extract_strided_slice %88 {offsets = [0, 0], sizes = [4, 32], strides = [1, 1]} : vector<4x64xf32> to vector<4x32xf32>
    %90 = vector.extract_strided_slice %88 {offsets = [0, 32], sizes = [4, 32], strides = [1, 1]} : vector<4x64xf32> to vector<4x32xf32>
    %91 = vector.extract_strided_slice %79 {offsets = [0, 64], sizes = [4, 32], strides = [1, 1]} : vector<4x96xf32> to vector<4x32xf32>
    %92 = vector.extract_strided_slice %80 {offsets = [0, 64], sizes = [4, 32], strides = [1, 1]} : vector<4x96xf32> to vector<4x32xf32>
    %93 = arith.addf %92, %15 : vector<4x32xf32>
    %94 = arith.mulf %89, %93 : vector<4x32xf32>
    %95 = arith.addf %91, %94 : vector<4x32xf32>
    %96 = math.tanh %95 : vector<4x32xf32>
    %97 = arith.subf %48, %96 : vector<4x32xf32>
    %98 = arith.mulf %90, %97 : vector<4x32xf32>
    %99 = arith.addf %96, %98 : vector<4x32xf32>
    %100 = vector.shape_cast %77 : vector<4x1xi1> to vector<4x1xi1>
    %101 = vector.broadcast %100 : vector<4x1xi1> to vector<4x32xi1>
    %102 = arith.select %101, %99, %48 : vector<4x32xi1>, vector<4x32xf32>
    %cst_32 = arith.constant dense<0.000000e+00> : vector<4x128xf32>
    %103 = tpu.matmul %102, %1, %cst_32 {dimension_numbers = #tpu.dot_dimension_numbers<[1], [0], [0], [1], [0, 0, 1, 1], [], []>} : vector<4x32xf32>, vector<32x128xf32>, vector<4x128xf32> -> vector<4x128xf32>
    %cst_33 = arith.constant dense<0.000000e+00> : vector<4x128xf32>
    %104 = tpu.matmul %71, %2, %cst_33 {dimension_numbers = #tpu.dot_dimension_numbers<[1], [0], [0], [1], [0, 0, 1, 1], [], []>} : vector<4x32xf32>, vector<32x128xf32>, vector<4x128xf32> -> vector<4x128xf32>
    %105 = arith.addf %103, %104 : vector<4x128xf32>
    %106 = arith.addf %105, %18 : vector<4x128xf32>
    %107 = vector.extract_strided_slice %106 {offsets = [0, 0], sizes = [4, 64], strides = [1, 1]} : vector<4x128xf32> to vector<4x64xf32>
    %108 = arith.negf %107 : vector<4x64xf32>
    %109 = math.exp %108 : vector<4x64xf32>
    %cst_34 = arith.constant 1.000000e+00 : f32
    %110 = vector.broadcast %cst_34 : f32 to vector<4x64xf32>
    %111 = arith.addf %110, %109 : vector<4x64xf32>
    %112 = arith.divf %110, %111 : vector<4x64xf32>
    %113 = vector.extract_strided_slice %112 {offsets = [0, 0], sizes = [4, 32], strides = [1, 1]} : vector<4x64xf32> to vector<4x32xf32>
    %114 = vector.extract_strided_slice %112 {offsets = [0, 32], sizes = [4, 32], strides = [1, 1]} : vector<4x64xf32> to vector<4x32xf32>
    %115 = vector.extract_strided_slice %106 {offsets = [0, 64], sizes = [4, 32], strides = [1, 1]} : vector<4x128xf32> to vector<4x32xf32>
    %116 = vector.extract_strided_slice %106 {offsets = [0, 96], sizes = [4, 32], strides = [1, 1]} : vector<4x128xf32> to vector<4x32xf32>
    %117 = arith.mulf %113, %116 : vector<4x32xf32>
    %118 = arith.addf %115, %117 : vector<4x32xf32>
    %119 = math.tanh %118 : vector<4x32xf32>
    %120 = arith.subf %71, %119 : vector<4x32xf32>
    %121 = arith.mulf %114, %120 : vector<4x32xf32>
    %122 = arith.addf %119, %121 : vector<4x32xf32>
    %123 = vector.shape_cast %77 : vector<4x1xi1> to vector<4x1xi1>
    %124 = vector.broadcast %123 : vector<4x1xi1> to vector<4x32xi1>
    %125 = arith.select %124, %122, %71 : vector<4x32xi1>, vector<4x32xf32>
    %cst_35 = arith.constant 0.000000e+00 : f32
    %126 = vector.shape_cast %77 : vector<4x1xi1> to vector<4x1xi1>
    %127 = vector.broadcast %126 : vector<4x1xi1> to vector<4x32xi1>
    %128 = vector.broadcast %cst_35 : f32 to vector<4x32xf32>
    %129 = arith.select %127, %122, %128 : vector<4x32xi1>, vector<4x32xf32>
    %c2_i32 = arith.constant 2 : i32
    %130 = vector.broadcast %c2_i32 : i32 to vector<4x1xi32>
    %131 = arith.cmpi sgt, %19, %130 : vector<4x1xi32>
    %132 = vector.extract_strided_slice %5 {offsets = [8, 0], sizes = [4, 96], strides = [1, 1]} : vector<32x96xf32> to vector<4x96xf32>
    %133 = arith.addf %132, %12 : vector<4x96xf32>
    %cst_36 = arith.constant dense<0.000000e+00> : vector<4x96xf32>
    %134 = tpu.matmul %102, %0, %cst_36 {dimension_numbers = #tpu.dot_dimension_numbers<[1], [0], [0], [1], [0, 0, 1, 1], [], []>} : vector<4x32xf32>, vector<32x96xf32>, vector<4x96xf32> -> vector<4x96xf32>
    %135 = vector.extract_strided_slice %133 {offsets = [0, 0], sizes = [4, 64], strides = [1, 1]} : vector<4x96xf32> to vector<4x64xf32>
    %136 = vector.extract_strided_slice %134 {offsets = [0, 0], sizes = [4, 64], strides = [1, 1]} : vector<4x96xf32> to vector<4x64xf32>
    %137 = arith.addf %135, %136 : vector<4x64xf32>
    %138 = arith.negf %137 : vector<4x64xf32>
    %139 = math.exp %138 : vector<4x64xf32>
    %cst_37 = arith.constant 1.000000e+00 : f32
    %140 = vector.broadcast %cst_37 : f32 to vector<4x64xf32>
    %141 = arith.addf %140, %139 : vector<4x64xf32>
    %142 = arith.divf %140, %141 : vector<4x64xf32>
    %143 = vector.extract_strided_slice %142 {offsets = [0, 0], sizes = [4, 32], strides = [1, 1]} : vector<4x64xf32> to vector<4x32xf32>
    %144 = vector.extract_strided_slice %142 {offsets = [0, 32], sizes = [4, 32], strides = [1, 1]} : vector<4x64xf32> to vector<4x32xf32>
    %145 = vector.extract_strided_slice %133 {offsets = [0, 64], sizes = [4, 32], strides = [1, 1]} : vector<4x96xf32> to vector<4x32xf32>
    %146 = vector.extract_strided_slice %134 {offsets = [0, 64], sizes = [4, 32], strides = [1, 1]} : vector<4x96xf32> to vector<4x32xf32>
    %147 = arith.addf %146, %15 : vector<4x32xf32>
    %148 = arith.mulf %143, %147 : vector<4x32xf32>
    %149 = arith.addf %145, %148 : vector<4x32xf32>
    %150 = math.tanh %149 : vector<4x32xf32>
    %151 = arith.subf %102, %150 : vector<4x32xf32>
    %152 = arith.mulf %144, %151 : vector<4x32xf32>
    %153 = arith.addf %150, %152 : vector<4x32xf32>
    %154 = vector.shape_cast %131 : vector<4x1xi1> to vector<4x1xi1>
    %155 = vector.broadcast %154 : vector<4x1xi1> to vector<4x32xi1>
    %156 = arith.select %155, %153, %102 : vector<4x32xi1>, vector<4x32xf32>
    %cst_38 = arith.constant dense<0.000000e+00> : vector<4x128xf32>
    %157 = tpu.matmul %156, %1, %cst_38 {dimension_numbers = #tpu.dot_dimension_numbers<[1], [0], [0], [1], [0, 0, 1, 1], [], []>} : vector<4x32xf32>, vector<32x128xf32>, vector<4x128xf32> -> vector<4x128xf32>
    %cst_39 = arith.constant dense<0.000000e+00> : vector<4x128xf32>
    %158 = tpu.matmul %125, %2, %cst_39 {dimension_numbers = #tpu.dot_dimension_numbers<[1], [0], [0], [1], [0, 0, 1, 1], [], []>} : vector<4x32xf32>, vector<32x128xf32>, vector<4x128xf32> -> vector<4x128xf32>
    %159 = arith.addf %157, %158 : vector<4x128xf32>
    %160 = arith.addf %159, %18 : vector<4x128xf32>
    %161 = vector.extract_strided_slice %160 {offsets = [0, 0], sizes = [4, 64], strides = [1, 1]} : vector<4x128xf32> to vector<4x64xf32>
    %162 = arith.negf %161 : vector<4x64xf32>
    %163 = math.exp %162 : vector<4x64xf32>
    %cst_40 = arith.constant 1.000000e+00 : f32
    %164 = vector.broadcast %cst_40 : f32 to vector<4x64xf32>
    %165 = arith.addf %164, %163 : vector<4x64xf32>
    %166 = arith.divf %164, %165 : vector<4x64xf32>
    %167 = vector.extract_strided_slice %166 {offsets = [0, 0], sizes = [4, 32], strides = [1, 1]} : vector<4x64xf32> to vector<4x32xf32>
    %168 = vector.extract_strided_slice %166 {offsets = [0, 32], sizes = [4, 32], strides = [1, 1]} : vector<4x64xf32> to vector<4x32xf32>
    %169 = vector.extract_strided_slice %160 {offsets = [0, 64], sizes = [4, 32], strides = [1, 1]} : vector<4x128xf32> to vector<4x32xf32>
    %170 = vector.extract_strided_slice %160 {offsets = [0, 96], sizes = [4, 32], strides = [1, 1]} : vector<4x128xf32> to vector<4x32xf32>
    %171 = arith.mulf %167, %170 : vector<4x32xf32>
    %172 = arith.addf %169, %171 : vector<4x32xf32>
    %173 = math.tanh %172 : vector<4x32xf32>
    %174 = arith.subf %125, %173 : vector<4x32xf32>
    %175 = arith.mulf %168, %174 : vector<4x32xf32>
    %176 = arith.addf %173, %175 : vector<4x32xf32>
    %177 = vector.shape_cast %131 : vector<4x1xi1> to vector<4x1xi1>
    %178 = vector.broadcast %177 : vector<4x1xi1> to vector<4x32xi1>
    %179 = arith.select %178, %176, %125 : vector<4x32xi1>, vector<4x32xf32>
    %cst_41 = arith.constant 0.000000e+00 : f32
    %180 = vector.shape_cast %131 : vector<4x1xi1> to vector<4x1xi1>
    %181 = vector.broadcast %180 : vector<4x1xi1> to vector<4x32xi1>
    %182 = vector.broadcast %cst_41 : f32 to vector<4x32xf32>
    %183 = arith.select %181, %176, %182 : vector<4x32xi1>, vector<4x32xf32>
    %c3_i32 = arith.constant 3 : i32
    %184 = vector.broadcast %c3_i32 : i32 to vector<4x1xi32>
    %185 = arith.cmpi sgt, %19, %184 : vector<4x1xi32>
    %186 = vector.extract_strided_slice %5 {offsets = [12, 0], sizes = [4, 96], strides = [1, 1]} : vector<32x96xf32> to vector<4x96xf32>
    %187 = arith.addf %186, %12 : vector<4x96xf32>
    %cst_42 = arith.constant dense<0.000000e+00> : vector<4x96xf32>
    %188 = tpu.matmul %156, %0, %cst_42 {dimension_numbers = #tpu.dot_dimension_numbers<[1], [0], [0], [1], [0, 0, 1, 1], [], []>} : vector<4x32xf32>, vector<32x96xf32>, vector<4x96xf32> -> vector<4x96xf32>
    %189 = vector.extract_strided_slice %187 {offsets = [0, 0], sizes = [4, 64], strides = [1, 1]} : vector<4x96xf32> to vector<4x64xf32>
    %190 = vector.extract_strided_slice %188 {offsets = [0, 0], sizes = [4, 64], strides = [1, 1]} : vector<4x96xf32> to vector<4x64xf32>
    %191 = arith.addf %189, %190 : vector<4x64xf32>
    %192 = arith.negf %191 : vector<4x64xf32>
    %193 = math.exp %192 : vector<4x64xf32>
    %cst_43 = arith.constant 1.000000e+00 : f32
    %194 = vector.broadcast %cst_43 : f32 to vector<4x64xf32>
    %195 = arith.addf %194, %193 : vector<4x64xf32>
    %196 = arith.divf %194, %195 : vector<4x64xf32>
    %197 = vector.extract_strided_slice %196 {offsets = [0, 0], sizes = [4, 32], strides = [1, 1]} : vector<4x64xf32> to vector<4x32xf32>
    %198 = vector.extract_strided_slice %196 {offsets = [0, 32], sizes = [4, 32], strides = [1, 1]} : vector<4x64xf32> to vector<4x32xf32>
    %199 = vector.extract_strided_slice %187 {offsets = [0, 64], sizes = [4, 32], strides = [1, 1]} : vector<4x96xf32> to vector<4x32xf32>
    %200 = vector.extract_strided_slice %188 {offsets = [0, 64], sizes = [4, 32], strides = [1, 1]} : vector<4x96xf32> to vector<4x32xf32>
    %201 = arith.addf %200, %15 : vector<4x32xf32>
    %202 = arith.mulf %197, %201 : vector<4x32xf32>
    %203 = arith.addf %199, %202 : vector<4x32xf32>
    %204 = math.tanh %203 : vector<4x32xf32>
    %205 = arith.subf %156, %204 : vector<4x32xf32>
    %206 = arith.mulf %198, %205 : vector<4x32xf32>
    %207 = arith.addf %204, %206 : vector<4x32xf32>
    %208 = vector.shape_cast %185 : vector<4x1xi1> to vector<4x1xi1>
    %209 = vector.broadcast %208 : vector<4x1xi1> to vector<4x32xi1>
    %210 = arith.select %209, %207, %156 : vector<4x32xi1>, vector<4x32xf32>
    %cst_44 = arith.constant dense<0.000000e+00> : vector<4x128xf32>
    %211 = tpu.matmul %210, %1, %cst_44 {dimension_numbers = #tpu.dot_dimension_numbers<[1], [0], [0], [1], [0, 0, 1, 1], [], []>} : vector<4x32xf32>, vector<32x128xf32>, vector<4x128xf32> -> vector<4x128xf32>
    %cst_45 = arith.constant dense<0.000000e+00> : vector<4x128xf32>
    %212 = tpu.matmul %179, %2, %cst_45 {dimension_numbers = #tpu.dot_dimension_numbers<[1], [0], [0], [1], [0, 0, 1, 1], [], []>} : vector<4x32xf32>, vector<32x128xf32>, vector<4x128xf32> -> vector<4x128xf32>
    %213 = arith.addf %211, %212 : vector<4x128xf32>
    %214 = arith.addf %213, %18 : vector<4x128xf32>
    %215 = vector.extract_strided_slice %214 {offsets = [0, 0], sizes = [4, 64], strides = [1, 1]} : vector<4x128xf32> to vector<4x64xf32>
    %216 = arith.negf %215 : vector<4x64xf32>
    %217 = math.exp %216 : vector<4x64xf32>
    %cst_46 = arith.constant 1.000000e+00 : f32
    %218 = vector.broadcast %cst_46 : f32 to vector<4x64xf32>
    %219 = arith.addf %218, %217 : vector<4x64xf32>
    %220 = arith.divf %218, %219 : vector<4x64xf32>
    %221 = vector.extract_strided_slice %220 {offsets = [0, 0], sizes = [4, 32], strides = [1, 1]} : vector<4x64xf32> to vector<4x32xf32>
    %222 = vector.extract_strided_slice %220 {offsets = [0, 32], sizes = [4, 32], strides = [1, 1]} : vector<4x64xf32> to vector<4x32xf32>
    %223 = vector.extract_strided_slice %214 {offsets = [0, 64], sizes = [4, 32], strides = [1, 1]} : vector<4x128xf32> to vector<4x32xf32>
    %224 = vector.extract_strided_slice %214 {offsets = [0, 96], sizes = [4, 32], strides = [1, 1]} : vector<4x128xf32> to vector<4x32xf32>
    %225 = arith.mulf %221, %224 : vector<4x32xf32>
    %226 = arith.addf %223, %225 : vector<4x32xf32>
    %227 = math.tanh %226 : vector<4x32xf32>
    %228 = arith.subf %179, %227 : vector<4x32xf32>
    %229 = arith.mulf %222, %228 : vector<4x32xf32>
    %230 = arith.addf %227, %229 : vector<4x32xf32>
    %231 = vector.shape_cast %185 : vector<4x1xi1> to vector<4x1xi1>
    %232 = vector.broadcast %231 : vector<4x1xi1> to vector<4x32xi1>
    %233 = arith.select %232, %230, %179 : vector<4x32xi1>, vector<4x32xf32>
    %cst_47 = arith.constant 0.000000e+00 : f32
    %234 = vector.shape_cast %185 : vector<4x1xi1> to vector<4x1xi1>
    %235 = vector.broadcast %234 : vector<4x1xi1> to vector<4x32xi1>
    %236 = vector.broadcast %cst_47 : f32 to vector<4x32xf32>
    %237 = arith.select %235, %230, %236 : vector<4x32xi1>, vector<4x32xf32>
    %c4_i32 = arith.constant 4 : i32
    %238 = vector.broadcast %c4_i32 : i32 to vector<4x1xi32>
    %239 = arith.cmpi sgt, %19, %238 : vector<4x1xi32>
    %240 = vector.extract_strided_slice %5 {offsets = [16, 0], sizes = [4, 96], strides = [1, 1]} : vector<32x96xf32> to vector<4x96xf32>
    %241 = arith.addf %240, %12 : vector<4x96xf32>
    %cst_48 = arith.constant dense<0.000000e+00> : vector<4x96xf32>
    %242 = tpu.matmul %210, %0, %cst_48 {dimension_numbers = #tpu.dot_dimension_numbers<[1], [0], [0], [1], [0, 0, 1, 1], [], []>} : vector<4x32xf32>, vector<32x96xf32>, vector<4x96xf32> -> vector<4x96xf32>
    %243 = vector.extract_strided_slice %241 {offsets = [0, 0], sizes = [4, 64], strides = [1, 1]} : vector<4x96xf32> to vector<4x64xf32>
    %244 = vector.extract_strided_slice %242 {offsets = [0, 0], sizes = [4, 64], strides = [1, 1]} : vector<4x96xf32> to vector<4x64xf32>
    %245 = arith.addf %243, %244 : vector<4x64xf32>
    %246 = arith.negf %245 : vector<4x64xf32>
    %247 = math.exp %246 : vector<4x64xf32>
    %cst_49 = arith.constant 1.000000e+00 : f32
    %248 = vector.broadcast %cst_49 : f32 to vector<4x64xf32>
    %249 = arith.addf %248, %247 : vector<4x64xf32>
    %250 = arith.divf %248, %249 : vector<4x64xf32>
    %251 = vector.extract_strided_slice %250 {offsets = [0, 0], sizes = [4, 32], strides = [1, 1]} : vector<4x64xf32> to vector<4x32xf32>
    %252 = vector.extract_strided_slice %250 {offsets = [0, 32], sizes = [4, 32], strides = [1, 1]} : vector<4x64xf32> to vector<4x32xf32>
    %253 = vector.extract_strided_slice %241 {offsets = [0, 64], sizes = [4, 32], strides = [1, 1]} : vector<4x96xf32> to vector<4x32xf32>
    %254 = vector.extract_strided_slice %242 {offsets = [0, 64], sizes = [4, 32], strides = [1, 1]} : vector<4x96xf32> to vector<4x32xf32>
    %255 = arith.addf %254, %15 : vector<4x32xf32>
    %256 = arith.mulf %251, %255 : vector<4x32xf32>
    %257 = arith.addf %253, %256 : vector<4x32xf32>
    %258 = math.tanh %257 : vector<4x32xf32>
    %259 = arith.subf %210, %258 : vector<4x32xf32>
    %260 = arith.mulf %252, %259 : vector<4x32xf32>
    %261 = arith.addf %258, %260 : vector<4x32xf32>
    %262 = vector.shape_cast %239 : vector<4x1xi1> to vector<4x1xi1>
    %263 = vector.broadcast %262 : vector<4x1xi1> to vector<4x32xi1>
    %264 = arith.select %263, %261, %210 : vector<4x32xi1>, vector<4x32xf32>
    %cst_50 = arith.constant dense<0.000000e+00> : vector<4x128xf32>
    %265 = tpu.matmul %264, %1, %cst_50 {dimension_numbers = #tpu.dot_dimension_numbers<[1], [0], [0], [1], [0, 0, 1, 1], [], []>} : vector<4x32xf32>, vector<32x128xf32>, vector<4x128xf32> -> vector<4x128xf32>
    %cst_51 = arith.constant dense<0.000000e+00> : vector<4x128xf32>
    %266 = tpu.matmul %233, %2, %cst_51 {dimension_numbers = #tpu.dot_dimension_numbers<[1], [0], [0], [1], [0, 0, 1, 1], [], []>} : vector<4x32xf32>, vector<32x128xf32>, vector<4x128xf32> -> vector<4x128xf32>
    %267 = arith.addf %265, %266 : vector<4x128xf32>
    %268 = arith.addf %267, %18 : vector<4x128xf32>
    %269 = vector.extract_strided_slice %268 {offsets = [0, 0], sizes = [4, 64], strides = [1, 1]} : vector<4x128xf32> to vector<4x64xf32>
    %270 = arith.negf %269 : vector<4x64xf32>
    %271 = math.exp %270 : vector<4x64xf32>
    %cst_52 = arith.constant 1.000000e+00 : f32
    %272 = vector.broadcast %cst_52 : f32 to vector<4x64xf32>
    %273 = arith.addf %272, %271 : vector<4x64xf32>
    %274 = arith.divf %272, %273 : vector<4x64xf32>
    %275 = vector.extract_strided_slice %274 {offsets = [0, 0], sizes = [4, 32], strides = [1, 1]} : vector<4x64xf32> to vector<4x32xf32>
    %276 = vector.extract_strided_slice %274 {offsets = [0, 32], sizes = [4, 32], strides = [1, 1]} : vector<4x64xf32> to vector<4x32xf32>
    %277 = vector.extract_strided_slice %268 {offsets = [0, 64], sizes = [4, 32], strides = [1, 1]} : vector<4x128xf32> to vector<4x32xf32>
    %278 = vector.extract_strided_slice %268 {offsets = [0, 96], sizes = [4, 32], strides = [1, 1]} : vector<4x128xf32> to vector<4x32xf32>
    %279 = arith.mulf %275, %278 : vector<4x32xf32>
    %280 = arith.addf %277, %279 : vector<4x32xf32>
    %281 = math.tanh %280 : vector<4x32xf32>
    %282 = arith.subf %233, %281 : vector<4x32xf32>
    %283 = arith.mulf %276, %282 : vector<4x32xf32>
    %284 = arith.addf %281, %283 : vector<4x32xf32>
    %285 = vector.shape_cast %239 : vector<4x1xi1> to vector<4x1xi1>
    %286 = vector.broadcast %285 : vector<4x1xi1> to vector<4x32xi1>
    %287 = arith.select %286, %284, %233 : vector<4x32xi1>, vector<4x32xf32>
    %cst_53 = arith.constant 0.000000e+00 : f32
    %288 = vector.shape_cast %239 : vector<4x1xi1> to vector<4x1xi1>
    %289 = vector.broadcast %288 : vector<4x1xi1> to vector<4x32xi1>
    %290 = vector.broadcast %cst_53 : f32 to vector<4x32xf32>
    %291 = arith.select %289, %284, %290 : vector<4x32xi1>, vector<4x32xf32>
    %c5_i32 = arith.constant 5 : i32
    %292 = vector.broadcast %c5_i32 : i32 to vector<4x1xi32>
    %293 = arith.cmpi sgt, %19, %292 : vector<4x1xi32>
    %294 = vector.extract_strided_slice %5 {offsets = [20, 0], sizes = [4, 96], strides = [1, 1]} : vector<32x96xf32> to vector<4x96xf32>
    %295 = arith.addf %294, %12 : vector<4x96xf32>
    %cst_54 = arith.constant dense<0.000000e+00> : vector<4x96xf32>
    %296 = tpu.matmul %264, %0, %cst_54 {dimension_numbers = #tpu.dot_dimension_numbers<[1], [0], [0], [1], [0, 0, 1, 1], [], []>} : vector<4x32xf32>, vector<32x96xf32>, vector<4x96xf32> -> vector<4x96xf32>
    %297 = vector.extract_strided_slice %295 {offsets = [0, 0], sizes = [4, 64], strides = [1, 1]} : vector<4x96xf32> to vector<4x64xf32>
    %298 = vector.extract_strided_slice %296 {offsets = [0, 0], sizes = [4, 64], strides = [1, 1]} : vector<4x96xf32> to vector<4x64xf32>
    %299 = arith.addf %297, %298 : vector<4x64xf32>
    %300 = arith.negf %299 : vector<4x64xf32>
    %301 = math.exp %300 : vector<4x64xf32>
    %cst_55 = arith.constant 1.000000e+00 : f32
    %302 = vector.broadcast %cst_55 : f32 to vector<4x64xf32>
    %303 = arith.addf %302, %301 : vector<4x64xf32>
    %304 = arith.divf %302, %303 : vector<4x64xf32>
    %305 = vector.extract_strided_slice %304 {offsets = [0, 0], sizes = [4, 32], strides = [1, 1]} : vector<4x64xf32> to vector<4x32xf32>
    %306 = vector.extract_strided_slice %304 {offsets = [0, 32], sizes = [4, 32], strides = [1, 1]} : vector<4x64xf32> to vector<4x32xf32>
    %307 = vector.extract_strided_slice %295 {offsets = [0, 64], sizes = [4, 32], strides = [1, 1]} : vector<4x96xf32> to vector<4x32xf32>
    %308 = vector.extract_strided_slice %296 {offsets = [0, 64], sizes = [4, 32], strides = [1, 1]} : vector<4x96xf32> to vector<4x32xf32>
    %309 = arith.addf %308, %15 : vector<4x32xf32>
    %310 = arith.mulf %305, %309 : vector<4x32xf32>
    %311 = arith.addf %307, %310 : vector<4x32xf32>
    %312 = math.tanh %311 : vector<4x32xf32>
    %313 = arith.subf %264, %312 : vector<4x32xf32>
    %314 = arith.mulf %306, %313 : vector<4x32xf32>
    %315 = arith.addf %312, %314 : vector<4x32xf32>
    %316 = vector.shape_cast %293 : vector<4x1xi1> to vector<4x1xi1>
    %317 = vector.broadcast %316 : vector<4x1xi1> to vector<4x32xi1>
    %318 = arith.select %317, %315, %264 : vector<4x32xi1>, vector<4x32xf32>
    %cst_56 = arith.constant dense<0.000000e+00> : vector<4x128xf32>
    %319 = tpu.matmul %318, %1, %cst_56 {dimension_numbers = #tpu.dot_dimension_numbers<[1], [0], [0], [1], [0, 0, 1, 1], [], []>} : vector<4x32xf32>, vector<32x128xf32>, vector<4x128xf32> -> vector<4x128xf32>
    %cst_57 = arith.constant dense<0.000000e+00> : vector<4x128xf32>
    %320 = tpu.matmul %287, %2, %cst_57 {dimension_numbers = #tpu.dot_dimension_numbers<[1], [0], [0], [1], [0, 0, 1, 1], [], []>} : vector<4x32xf32>, vector<32x128xf32>, vector<4x128xf32> -> vector<4x128xf32>
    %321 = arith.addf %319, %320 : vector<4x128xf32>
    %322 = arith.addf %321, %18 : vector<4x128xf32>
    %323 = vector.extract_strided_slice %322 {offsets = [0, 0], sizes = [4, 64], strides = [1, 1]} : vector<4x128xf32> to vector<4x64xf32>
    %324 = arith.negf %323 : vector<4x64xf32>
    %325 = math.exp %324 : vector<4x64xf32>
    %cst_58 = arith.constant 1.000000e+00 : f32
    %326 = vector.broadcast %cst_58 : f32 to vector<4x64xf32>
    %327 = arith.addf %326, %325 : vector<4x64xf32>
    %328 = arith.divf %326, %327 : vector<4x64xf32>
    %329 = vector.extract_strided_slice %328 {offsets = [0, 0], sizes = [4, 32], strides = [1, 1]} : vector<4x64xf32> to vector<4x32xf32>
    %330 = vector.extract_strided_slice %328 {offsets = [0, 32], sizes = [4, 32], strides = [1, 1]} : vector<4x64xf32> to vector<4x32xf32>
    %331 = vector.extract_strided_slice %322 {offsets = [0, 64], sizes = [4, 32], strides = [1, 1]} : vector<4x128xf32> to vector<4x32xf32>
    %332 = vector.extract_strided_slice %322 {offsets = [0, 96], sizes = [4, 32], strides = [1, 1]} : vector<4x128xf32> to vector<4x32xf32>
    %333 = arith.mulf %329, %332 : vector<4x32xf32>
    %334 = arith.addf %331, %333 : vector<4x32xf32>
    %335 = math.tanh %334 : vector<4x32xf32>
    %336 = arith.subf %287, %335 : vector<4x32xf32>
    %337 = arith.mulf %330, %336 : vector<4x32xf32>
    %338 = arith.addf %335, %337 : vector<4x32xf32>
    %339 = vector.shape_cast %293 : vector<4x1xi1> to vector<4x1xi1>
    %340 = vector.broadcast %339 : vector<4x1xi1> to vector<4x32xi1>
    %341 = arith.select %340, %338, %287 : vector<4x32xi1>, vector<4x32xf32>
    %cst_59 = arith.constant 0.000000e+00 : f32
    %342 = vector.shape_cast %293 : vector<4x1xi1> to vector<4x1xi1>
    %343 = vector.broadcast %342 : vector<4x1xi1> to vector<4x32xi1>
    %344 = vector.broadcast %cst_59 : f32 to vector<4x32xf32>
    %345 = arith.select %343, %338, %344 : vector<4x32xi1>, vector<4x32xf32>
    %c6_i32 = arith.constant 6 : i32
    %346 = vector.broadcast %c6_i32 : i32 to vector<4x1xi32>
    %347 = arith.cmpi sgt, %19, %346 : vector<4x1xi32>
    %348 = vector.extract_strided_slice %5 {offsets = [24, 0], sizes = [4, 96], strides = [1, 1]} : vector<32x96xf32> to vector<4x96xf32>
    %349 = arith.addf %348, %12 : vector<4x96xf32>
    %cst_60 = arith.constant dense<0.000000e+00> : vector<4x96xf32>
    %350 = tpu.matmul %318, %0, %cst_60 {dimension_numbers = #tpu.dot_dimension_numbers<[1], [0], [0], [1], [0, 0, 1, 1], [], []>} : vector<4x32xf32>, vector<32x96xf32>, vector<4x96xf32> -> vector<4x96xf32>
    %351 = vector.extract_strided_slice %349 {offsets = [0, 0], sizes = [4, 64], strides = [1, 1]} : vector<4x96xf32> to vector<4x64xf32>
    %352 = vector.extract_strided_slice %350 {offsets = [0, 0], sizes = [4, 64], strides = [1, 1]} : vector<4x96xf32> to vector<4x64xf32>
    %353 = arith.addf %351, %352 : vector<4x64xf32>
    %354 = arith.negf %353 : vector<4x64xf32>
    %355 = math.exp %354 : vector<4x64xf32>
    %cst_61 = arith.constant 1.000000e+00 : f32
    %356 = vector.broadcast %cst_61 : f32 to vector<4x64xf32>
    %357 = arith.addf %356, %355 : vector<4x64xf32>
    %358 = arith.divf %356, %357 : vector<4x64xf32>
    %359 = vector.extract_strided_slice %358 {offsets = [0, 0], sizes = [4, 32], strides = [1, 1]} : vector<4x64xf32> to vector<4x32xf32>
    %360 = vector.extract_strided_slice %358 {offsets = [0, 32], sizes = [4, 32], strides = [1, 1]} : vector<4x64xf32> to vector<4x32xf32>
    %361 = vector.extract_strided_slice %349 {offsets = [0, 64], sizes = [4, 32], strides = [1, 1]} : vector<4x96xf32> to vector<4x32xf32>
    %362 = vector.extract_strided_slice %350 {offsets = [0, 64], sizes = [4, 32], strides = [1, 1]} : vector<4x96xf32> to vector<4x32xf32>
    %363 = arith.addf %362, %15 : vector<4x32xf32>
    %364 = arith.mulf %359, %363 : vector<4x32xf32>
    %365 = arith.addf %361, %364 : vector<4x32xf32>
    %366 = math.tanh %365 : vector<4x32xf32>
    %367 = arith.subf %318, %366 : vector<4x32xf32>
    %368 = arith.mulf %360, %367 : vector<4x32xf32>
    %369 = arith.addf %366, %368 : vector<4x32xf32>
    %370 = vector.shape_cast %347 : vector<4x1xi1> to vector<4x1xi1>
    %371 = vector.broadcast %370 : vector<4x1xi1> to vector<4x32xi1>
    %372 = arith.select %371, %369, %318 : vector<4x32xi1>, vector<4x32xf32>
    %cst_62 = arith.constant dense<0.000000e+00> : vector<4x128xf32>
    %373 = tpu.matmul %372, %1, %cst_62 {dimension_numbers = #tpu.dot_dimension_numbers<[1], [0], [0], [1], [0, 0, 1, 1], [], []>} : vector<4x32xf32>, vector<32x128xf32>, vector<4x128xf32> -> vector<4x128xf32>
    %cst_63 = arith.constant dense<0.000000e+00> : vector<4x128xf32>
    %374 = tpu.matmul %341, %2, %cst_63 {dimension_numbers = #tpu.dot_dimension_numbers<[1], [0], [0], [1], [0, 0, 1, 1], [], []>} : vector<4x32xf32>, vector<32x128xf32>, vector<4x128xf32> -> vector<4x128xf32>
    %375 = arith.addf %373, %374 : vector<4x128xf32>
    %376 = arith.addf %375, %18 : vector<4x128xf32>
    %377 = vector.extract_strided_slice %376 {offsets = [0, 0], sizes = [4, 64], strides = [1, 1]} : vector<4x128xf32> to vector<4x64xf32>
    %378 = arith.negf %377 : vector<4x64xf32>
    %379 = math.exp %378 : vector<4x64xf32>
    %cst_64 = arith.constant 1.000000e+00 : f32
    %380 = vector.broadcast %cst_64 : f32 to vector<4x64xf32>
    %381 = arith.addf %380, %379 : vector<4x64xf32>
    %382 = arith.divf %380, %381 : vector<4x64xf32>
    %383 = vector.extract_strided_slice %382 {offsets = [0, 0], sizes = [4, 32], strides = [1, 1]} : vector<4x64xf32> to vector<4x32xf32>
    %384 = vector.extract_strided_slice %382 {offsets = [0, 32], sizes = [4, 32], strides = [1, 1]} : vector<4x64xf32> to vector<4x32xf32>
    %385 = vector.extract_strided_slice %376 {offsets = [0, 64], sizes = [4, 32], strides = [1, 1]} : vector<4x128xf32> to vector<4x32xf32>
    %386 = vector.extract_strided_slice %376 {offsets = [0, 96], sizes = [4, 32], strides = [1, 1]} : vector<4x128xf32> to vector<4x32xf32>
    %387 = arith.mulf %383, %386 : vector<4x32xf32>
    %388 = arith.addf %385, %387 : vector<4x32xf32>
    %389 = math.tanh %388 : vector<4x32xf32>
    %390 = arith.subf %341, %389 : vector<4x32xf32>
    %391 = arith.mulf %384, %390 : vector<4x32xf32>
    %392 = arith.addf %389, %391 : vector<4x32xf32>
    %393 = vector.shape_cast %347 : vector<4x1xi1> to vector<4x1xi1>
    %394 = vector.broadcast %393 : vector<4x1xi1> to vector<4x32xi1>
    %395 = arith.select %394, %392, %341 : vector<4x32xi1>, vector<4x32xf32>
    %cst_65 = arith.constant 0.000000e+00 : f32
    %396 = vector.shape_cast %347 : vector<4x1xi1> to vector<4x1xi1>
    %397 = vector.broadcast %396 : vector<4x1xi1> to vector<4x32xi1>
    %398 = vector.broadcast %cst_65 : f32 to vector<4x32xf32>
    %399 = arith.select %397, %392, %398 : vector<4x32xi1>, vector<4x32xf32>
    %c7_i32 = arith.constant 7 : i32
    %400 = vector.broadcast %c7_i32 : i32 to vector<4x1xi32>
    %401 = arith.cmpi sgt, %19, %400 : vector<4x1xi32>
    %402 = vector.extract_strided_slice %5 {offsets = [28, 0], sizes = [4, 96], strides = [1, 1]} : vector<32x96xf32> to vector<4x96xf32>
    %403 = arith.addf %402, %12 : vector<4x96xf32>
    %cst_66 = arith.constant dense<0.000000e+00> : vector<4x96xf32>
    %404 = tpu.matmul %372, %0, %cst_66 {dimension_numbers = #tpu.dot_dimension_numbers<[1], [0], [0], [1], [0, 0, 1, 1], [], []>} : vector<4x32xf32>, vector<32x96xf32>, vector<4x96xf32> -> vector<4x96xf32>
    %405 = vector.extract_strided_slice %403 {offsets = [0, 0], sizes = [4, 64], strides = [1, 1]} : vector<4x96xf32> to vector<4x64xf32>
    %406 = vector.extract_strided_slice %404 {offsets = [0, 0], sizes = [4, 64], strides = [1, 1]} : vector<4x96xf32> to vector<4x64xf32>
    %407 = arith.addf %405, %406 : vector<4x64xf32>
    %408 = arith.negf %407 : vector<4x64xf32>
    %409 = math.exp %408 : vector<4x64xf32>
    %cst_67 = arith.constant 1.000000e+00 : f32
    %410 = vector.broadcast %cst_67 : f32 to vector<4x64xf32>
    %411 = arith.addf %410, %409 : vector<4x64xf32>
    %412 = arith.divf %410, %411 : vector<4x64xf32>
    %413 = vector.extract_strided_slice %412 {offsets = [0, 0], sizes = [4, 32], strides = [1, 1]} : vector<4x64xf32> to vector<4x32xf32>
    %414 = vector.extract_strided_slice %412 {offsets = [0, 32], sizes = [4, 32], strides = [1, 1]} : vector<4x64xf32> to vector<4x32xf32>
    %415 = vector.extract_strided_slice %403 {offsets = [0, 64], sizes = [4, 32], strides = [1, 1]} : vector<4x96xf32> to vector<4x32xf32>
    %416 = vector.extract_strided_slice %404 {offsets = [0, 64], sizes = [4, 32], strides = [1, 1]} : vector<4x96xf32> to vector<4x32xf32>
    %417 = arith.addf %416, %15 : vector<4x32xf32>
    %418 = arith.mulf %413, %417 : vector<4x32xf32>
    %419 = arith.addf %415, %418 : vector<4x32xf32>
    %420 = math.tanh %419 : vector<4x32xf32>
    %421 = arith.subf %372, %420 : vector<4x32xf32>
    %422 = arith.mulf %414, %421 : vector<4x32xf32>
    %423 = arith.addf %420, %422 : vector<4x32xf32>
    %424 = vector.shape_cast %401 : vector<4x1xi1> to vector<4x1xi1>
    %425 = vector.broadcast %424 : vector<4x1xi1> to vector<4x32xi1>
    %426 = arith.select %425, %423, %372 : vector<4x32xi1>, vector<4x32xf32>
    %cst_68 = arith.constant dense<0.000000e+00> : vector<4x128xf32>
    %427 = tpu.matmul %426, %1, %cst_68 {dimension_numbers = #tpu.dot_dimension_numbers<[1], [0], [0], [1], [0, 0, 1, 1], [], []>} : vector<4x32xf32>, vector<32x128xf32>, vector<4x128xf32> -> vector<4x128xf32>
    %cst_69 = arith.constant dense<0.000000e+00> : vector<4x128xf32>
    %428 = tpu.matmul %395, %2, %cst_69 {dimension_numbers = #tpu.dot_dimension_numbers<[1], [0], [0], [1], [0, 0, 1, 1], [], []>} : vector<4x32xf32>, vector<32x128xf32>, vector<4x128xf32> -> vector<4x128xf32>
    %429 = arith.addf %427, %428 : vector<4x128xf32>
    %430 = arith.addf %429, %18 : vector<4x128xf32>
    %431 = vector.extract_strided_slice %430 {offsets = [0, 0], sizes = [4, 64], strides = [1, 1]} : vector<4x128xf32> to vector<4x64xf32>
    %432 = arith.negf %431 : vector<4x64xf32>
    %433 = math.exp %432 : vector<4x64xf32>
    %cst_70 = arith.constant 1.000000e+00 : f32
    %434 = vector.broadcast %cst_70 : f32 to vector<4x64xf32>
    %435 = arith.addf %434, %433 : vector<4x64xf32>
    %436 = arith.divf %434, %435 : vector<4x64xf32>
    %437 = vector.extract_strided_slice %436 {offsets = [0, 0], sizes = [4, 32], strides = [1, 1]} : vector<4x64xf32> to vector<4x32xf32>
    %438 = vector.extract_strided_slice %436 {offsets = [0, 32], sizes = [4, 32], strides = [1, 1]} : vector<4x64xf32> to vector<4x32xf32>
    %439 = vector.extract_strided_slice %430 {offsets = [0, 64], sizes = [4, 32], strides = [1, 1]} : vector<4x128xf32> to vector<4x32xf32>
    %440 = vector.extract_strided_slice %430 {offsets = [0, 96], sizes = [4, 32], strides = [1, 1]} : vector<4x128xf32> to vector<4x32xf32>
    %441 = arith.mulf %437, %440 : vector<4x32xf32>
    %442 = arith.addf %439, %441 : vector<4x32xf32>
    %443 = math.tanh %442 : vector<4x32xf32>
    %444 = arith.subf %395, %443 : vector<4x32xf32>
    %445 = arith.mulf %438, %444 : vector<4x32xf32>
    %446 = arith.addf %443, %445 : vector<4x32xf32>
    %cst_71 = arith.constant 0.000000e+00 : f32
    %447 = vector.shape_cast %401 : vector<4x1xi1> to vector<4x1xi1>
    %448 = vector.broadcast %447 : vector<4x1xi1> to vector<4x32xi1>
    %449 = vector.broadcast %cst_71 : f32 to vector<4x32xf32>
    %450 = arith.select %448, %446, %449 : vector<4x32xi1>, vector<4x32xf32>
    %451 = tpu.concatenate %75, %129, %183, %237, %291, %345, %399, %450 in 1 : vector<4x32xf32>, vector<4x32xf32>, vector<4x32xf32>, vector<4x32xf32>, vector<4x32xf32>, vector<4x32xf32>, vector<4x32xf32>, vector<4x32xf32> -> vector<4x256xf32>
    %c0_72 = arith.constant 0 : index
    %c0_73 = arith.constant 0 : index
    %452 = vector.load %arg11[%c0_72, %c0_73] : memref<4x256xf32, #tpu.memory_space<vmem>>, vector<4x256xf32>
    tpu.vector_store %arg11[%c0_72, %c0_73], %451 {strides = array<i32>} : memref<4x256xf32, #tpu.memory_space<vmem>>, vector<4x256xf32>,
    return
  }
}

</mosaic_0001>

<bundles_post_ra>
// kernel: seqnet_forward.1
= control target key start
LH: loop header
LB: loop body
LE: loop exit
PB: predicated region body
PF: predicated region fallthrough
CT: control target
= control target key end

     0   :  { %16 = vsyncpa [#allocation3], 0  ;;  %s4318_s0 = inlined_call_operand.hbm [shape: f32[32,8], index: 0, kind: input, shape index: {}]   ;;  %s4319_s1 = inlined_call_operand.hbm [shape: f32[4,16], index: 1, kind: input, shape index: {}]   ;;  %s4320_s2 = inlined_call_operand.vmem [shape: s32[4,1], index: 2, kind: input, shape index: {}]   ;;  %s4321_s3 = inlined_call_operand.vmem [shape: f32[8,96], index: 3, kind: input, shape index: {}]   ;;  %s4322_s4 = inlined_call_operand.hbm [shape: f32[16,96], index: 4, kind: input, shape index: {}]   ;;  %s4323_s5 = inlined_call_operand.vmem [shape: f32[1,96], index: 5, kind: input, shape index: {}]   ;;  %s4324_s6 = inlined_call_operand.vmem [shape: f32[32,96], index: 6, kind: input, shape index: {}]   ;;  %s4325_s7 = inlined_call_operand.vmem [shape: f32[1,32], index: 7, kind: input, shape index: {}]   ;;  %s4326_s8 = inlined_call_operand.hbm [shape: f32[32,128], index: 8, kind: input, shape index: {}]   ;;  %s4327_s9 = inlined_call_operand.hbm [shape: f32[32,128], index: 9, kind: input, shape index: {}]   ;;  %s4328_s10 = inlined_call_operand.hbm [shape: f32[1,128], index: 10, kind: input, shape index: {}]   ;;  %s4329_s11 = inlined_call_operand.vmem [shape: f32[4,256], index: 11, kind: output, shape index: {}]  }
   0x1   :  { %17 = vsyncpa [#allocation5], 0 }
   0x2   :  { %18 = vsyncpa [#allocation8], 0 }
   0x3   :  { %19 = vsyncpa [#allocation11], 0  ;;  %s3610_s17 = smov [#allocation4]   ;;  %s3470_s21 = scalar_lea.hbm %s4319_s1, 64 }
   0x4   :  { %s38_s18 = sshll.u32 %s3610_s17, 4  ;;  %p3471_p0 = scmp.ne.s32.totalorder %s4319_s1, %s3470_s21  ;;  %s39_s18 = int_to_ptr.vmem [resolvable:$true] %s38_s18 }
   0x5   :  { %p3474_p1 = scmp.lt.u32.totalorder %s3470_s21, %s4319_s1 }
   0x7   :  { %p3476_p2 = pnand %p3474_p1, %p3471_p0 }
   0x9   :  { %3479 = shalt.err (!%p3476_p2)
}
   0xa   :  { %s3480_s26 = scalar_lea.vmem %s39_s18, 64  ;;  %p3485_p4 = scmp.lt.s32.totalorder %s39_s18, %s39_s18 }
   0xb   :  { %p3481_p3 = scmp.ne.s32.totalorder %s39_s18, %s3480_s26  ;;  %p3486_p5 = scmp.lt.s32.totalorder %s3480_s26, %s3480_s26 }
   0xd   :  { %p3487_p6 = por %p3486_p5, %p3485_p4 }
   0xf   :  { %p3488_p7 = pnand %p3487_p6, %p3481_p3 }
  0x11   :  { %3491 = shalt.err (!%p3488_p7)
}
  0x12   :  { %41 = dma.hbm_to_vmem [thread:$0]  %s4319_s1, 64, %s39_s18, [#allocation5]  }
  0x13   :  { %s3611_s29 = smov [#allocation7]   ;;  %s3612_s12 = smov [#allocation2]  }
  0x14   :  { %s69_s30 = sshll.u32 %s3611_s29, 4  ;;  %s25_s13 = sshll.u32 %s3612_s12, 4  ;;  %s70_s30 = int_to_ptr.vmem [resolvable:$true] %s69_s30  ;;  %s26_s13 = int_to_ptr.vmem [resolvable:$true] %s25_s13 }
  0x15   :  { %s3492_s16 = scalar_lea.hbm %s4326_s8, 512 }
  0x16   :  { %p3493_p8 = scmp.ne.s32.totalorder %s4326_s8, %s3492_s16  ;;  %p3496_p9 = scmp.lt.u32.totalorder %s3492_s16, %s4326_s8 }
  0x18   :  { %p3498_p10 = pnand %p3496_p9, %p3493_p8 }
  0x1a   :  { %3501 = shalt.err (!%p3498_p10)
}
  0x1b   :  { %s3502_s1 = scalar_lea.vmem %s70_s30, 512  ;;  %p3507_p12 = scmp.lt.s32.totalorder %s70_s30, %s70_s30 }
  0x1c   :  { %p3503_p11 = scmp.ne.s32.totalorder %s70_s30, %s3502_s1  ;;  %p3508_p13 = scmp.lt.s32.totalorder %s3502_s1, %s3502_s1 }
  0x1e   :  { %p3509_p0 = por %p3508_p13, %p3507_p12 }
  0x20   :  { %p3510_p1 = pnand %p3509_p0, %p3503_p11 }
  0x22   :  { %3513 = shalt.err (!%p3510_p1)
}
  0x23   :  { %s3613_s18 = smov 128   ;;  %s3614_s22 = smov 8  }
  0x24   :  { %75 = dma.hbm_to_vmem [thread:$0]  %s4326_s8, 512, %s70_s30, [#allocation8], %s3613_s18, %s3613_s18, %s3614_s22  }
  0x25   :  { %s3514_s27 = scalar_lea.hbm %s4318_s0, 512 }
  0x26   :  { %p3515_p2 = scmp.ne.s32.totalorder %s4318_s0, %s3514_s27  ;;  %p3518_p3 = scmp.lt.u32.totalorder %s3514_s27, %s4318_s0 }
  0x28   :  { %p3520_p4 = pnand %p3518_p3, %p3515_p2 }
  0x2a   :  { %3523 = shalt.err (!%p3520_p4)
}
  0x2b   :  { %s3524_s15 = scalar_lea.vmem %s26_s13, 512  ;;  %p3529_p6 = scmp.lt.s32.totalorder %s26_s13, %s26_s13 }
  0x2c   :  { %p3525_p5 = scmp.ne.s32.totalorder %s26_s13, %s3524_s15  ;;  %p3530_p7 = scmp.lt.s32.totalorder %s3524_s15, %s3524_s15 }
  0x2e   :  { %p3531_p8 = por %p3530_p7, %p3529_p6 }
  0x30   :  { %p3532_p9 = pnand %p3531_p8, %p3525_p5 }
  0x32   :  { %3535 = shalt.err (!%p3532_p9)
}
  0x33   :  { %31 = dma.hbm_to_vmem [thread:$0]  %s4318_s0, 512, %s26_s13, [#allocation3], %s3613_s18, %s3613_s18, %s3614_s22  }
  0x34   :  { %s3615_s16 = smov [#allocation6]   ;;  %s3616_s19 = smov [#allocation9]  }
  0x35   :  { %s51_s17 = sshll.u32 %s3615_s16, 4  ;;  %s81_s20 = sshll.u32 %s3616_s19, 4  ;;  %s52_s17 = int_to_ptr.vmem [resolvable:$true] %s51_s17  ;;  %s82_s20 = int_to_ptr.vmem [resolvable:$true] %s81_s20 }
  0x36   :  { %s3536_s23 = scalar_lea.hbm %s4322_s4, 256 }
  0x37   :  { %p3537_p10 = scmp.ne.s32.totalorder %s4322_s4, %s3536_s23  ;;  %p3540_p11 = scmp.lt.u32.totalorder %s3536_s23, %s4322_s4 }
  0x39   :  { %p3542_p12 = pnand %p3540_p11, %p3537_p10 }
  0x3b   :  { %3545 = shalt.err (!%p3542_p12)
}
  0x3c   :  { %s3546_s0 = scalar_lea.vmem %s52_s17, 256  ;;  %p3551_p0 = scmp.lt.s32.totalorder %s52_s17, %s52_s17 }
  0x3d   :  { %p3547_p13 = scmp.ne.s32.totalorder %s52_s17, %s3546_s0  ;;  %p3552_p1 = scmp.lt.s32.totalorder %s3546_s0, %s3546_s0 }
  0x3f   :  { %p3553_p2 = por %p3552_p1, %p3551_p0 }
  0x41   :  { %p3554_p3 = pnand %p3553_p2, %p3547_p13 }
  0x43   :  { %3557 = shalt.err (!%p3554_p3)
}
  0x44   :  { %57 = dma.hbm_to_vmem [thread:$0]  %s4322_s4, 256, %s52_s17, [#allocation5], %s3613_s18, %s3613_s18, %s3614_s22  }
  0x45   :  { %s3558_s14 = scalar_lea.hbm %s4327_s9, 512 }
  0x46   :  { %p3559_p4 = scmp.ne.s32.totalorder %s4327_s9, %s3558_s14  ;;  %p3562_p5 = scmp.lt.u32.totalorder %s3558_s14, %s4327_s9 }
  0x48   :  { %p3564_p6 = pnand %p3562_p5, %p3559_p4 }
  0x4a   :  { %3567 = shalt.err (!%p3564_p6)
}
  0x4b   :  { %s3568_s19 = scalar_lea.vmem %s82_s20, 512  ;;  %p3573_p8 = scmp.lt.s32.totalorder %s82_s20, %s82_s20 }
  0x4c   :  { %p3569_p7 = scmp.ne.s32.totalorder %s82_s20, %s3568_s19  ;;  %p3574_p9 = scmp.lt.s32.totalorder %s3568_s19, %s3568_s19 }
  0x4e   :  { %p3575_p10 = por %p3574_p9, %p3573_p8 }
  0x50   :  { %p3576_p11 = pnand %p3575_p10, %p3569_p7 }
  0x52   :  { %3579 = shalt.err (!%p3576_p11)
}
  0x53   :  { %87 = dma.hbm_to_vmem [thread:$0]  %s4327_s9, 512, %s82_s20, [#allocation8], %s3613_s18, %s3613_s18, %s3614_s22  }
  0x54   :  { %s3617_s21 = smov [#allocation10]   ;;  %s3580_s25 = scalar_lea.hbm %s4328_s10, 16 }
  0x55   :  { %s94_s1 = sshll.u32 %s3617_s21, 4  ;;  %p3581_p12 = scmp.ne.s32.totalorder %s4328_s10, %s3580_s25  ;;  %s95_s1 = int_to_ptr.vmem [resolvable:$true] %s94_s1 }
  0x56   :  { %p3584_p13 = scmp.lt.u32.totalorder %s3580_s25, %s4328_s10 }
  0x58   :  { %p3586_p0 = pnand %p3584_p13, %p3581_p12 }
  0x5a   :  { %3589 = shalt.err (!%p3586_p0)
}
  0x5b   :  { %s3590_s28 = scalar_lea.vmem %s95_s1, 16  ;;  %s3594_s9 = scalar_lea.vmem %s95_s1, 32 }
  0x5c   :  { %p3591_p1 = scmp.ne.s32.totalorder %s95_s1, %s3590_s28  ;;  %p3595_p2 = scmp.lt.s32.totalorder %s95_s1, %s95_s1 }
  0x5d   :  { %p3596_p3 = scmp.lt.s32.totalorder %s3594_s9, %s3590_s28 }
  0x5f   :  { %p3597_p4 = por %p3596_p3, %p3595_p2 }
  0x61   :  { %p3598_p5 = pnand %p3597_p4, %p3591_p1 }
  0x63   :  { %3601 = shalt.err (!%p3598_p5)
}
  0x64   :  { %97 = dma.hbm_to_vmem [thread:$0]  %s4328_s10, 16, %s95_s1, [#allocation11]  }
  0x65   :  { %3602 = dma.done.wait [#allocation3], 512  }
  0x66   :  { %3603 = vsyncadd [#allocation3], 4294966784 }
  0x67   :  { %3604 = dma.done.wait [#allocation5], 320  }
  0x68   :  { %3605 = vsyncadd [#allocation5], 4294966976 }
  0x69   :  { %3606 = dma.done.wait [#allocation8], 1024  }
  0x6a   :  { %3607 = vsyncadd [#allocation8], 4294966272 }
  0x6b   :  { %3608 = dma.done.wait [#allocation11], 16  }
  0x6c   :  { %3609 = vsyncadd [#allocation11], 4294967280  ;;  %v3618_v0 = vmov 0.0|0.0   ;;  %vm3619_vm0 = vmmov 0   ;;  %v3620_v1 = vmov 0.0   ;;  %vm133_vm1 = vcmask 64512  }
  0x6d   :  { %3208 = vmatprep.subr.bf16.mxu1 %v3618_v0  ;;  %2941 = vmatprep.mubr.msk.f32.mxu1 %vm3619_vm0, %v3620_v1  ;;  %v132_v2 = vld [vmem:[%s4321_s3] sm:$0xff]  ;;  %v129_v4 = vld [vmem:[#allocation2 + $0x8] sm:$0xff]  ;;  %v130_v10 = vld [vmem:[#allocation2 + $0x10] sm:$0xff]  ;;  %vm241_vm2 = vcmask 130048   ;;  %s3621_s17 = smov 64   ;;  %v3622_v47 = vmov 0  }
  0x6e   :  { %v128_v3 = vld [vmem:[#allocation2] sm:$0xff]  ;;  %2929 = vmatprep.subr.mxu0 %v132_v2  ;;  %v233_v6 = vld [vmem:[#allocation6 + $0x8] sm:$0xff]  ;;  %v119_v13 = vld [vmem:[%s4324_s6 + $0x18] sm:$0xff]  ;;  %3370 = vset.pattern.permute.xlu0 %v3622_v47  ;;  %s3623_s1 = smov 96   ;;  %s3624_s23 = smov 32   ;;  %vm331_vm5 = vcmask 261120  }
  0x6f   :  { %2931 = vmatprep.mubr.msk.f32.mxu0 %vm133_vm1, %v128_v3  ;;  %v232_v5 = vld [vmem:[#allocation6] sm:$0xff]  ;;  %2930 = vmatpush3.msra.mxu0 %v132_v2  ;;  %v118_v12 = vld [vmem:[%s4324_s6 + $0x10] sm:$0xff]  ;;  %v231_v14 = vld [vmem:[#allocation4] sm:$0xf] }
  0x70   :  { %v116_v7 = vld [vmem:[%s4324_s6] sm:$0xff]  ;;  %v3209_v8 = vpack.c.bf16 %v233_v6, %v232_v5  ;;  %v117_v9 = vld [vmem:[%s4324_s6 + $0x8] sm:$0xff]  ;;  %2932 = vmatmul.mubr.msk.f32.vlgmr.msra.gmra.mrb[0].mxu0 %vm133_vm1, %v129_v4  ;;  %3211 = vmatprep.subr.bf16.mxu0 %v3618_v0  ;;  %v131_v15 = vld [vmem:[#allocation2 + $0x18] sm:$0xff]  ;;  %v3797_v17 = vpack.c.bf16 %v119_v13, %v118_v12 }
  0x71   :  { %v3784_v11 = vpack.c.bf16 %v117_v9, %v116_v7  ;;  %2934 = vmatprep.mubr.msk.f32.mxu0 %vm133_vm1, %v130_v10  ;;  %v2761_v16 = vld [vmem:[%s4325_s7] ss:$0 sm:$0xff]  ;;  %3371 = vset.pattern.permute.xlu1 %v3622_v47  ;;  %v124_v53 = vld [vmem:[#allocation9] sm:$0xff]  ;;  %v126_v55 = vld [vmem:[#allocation9 + $0x10] sm:$0xff] }
  0x72   :  { %3210 = vmatpush3.bf16.msra.mxu1 %v3209_v8  ;;  %412 = vrot.lane.b32.xlu0 %v2761_v16, %s3621_s17  ;;  %v2759_v20 = vld [vmem:[%s4323_s5] ss:$0 sm:$0xff]  ;;  %v127_v57 = vld [vmem:[#allocation9 + $0x18] sm:$0xff]  ;;  %v120_v58 = vld [vmem:[#allocation7] sm:$0xff] }
  0x73   :  { %3213 = vmatpush3.bf16.msra.mxu0 %v3784_v11  ;;  %3217 = vmatprep.subr.bf16.mxu1 %v3618_v0  ;;  %v3837_v46 = vld [vmem:[%s4320_s2] sm:$0xf]  ;;  %v122_v61 = vld [vmem:[#allocation7 + $0x10] sm:$0xff]  ;;  %v123_v62 = vld [vmem:[#allocation7 + $0x18] sm:$0xff]  ;;  %v3849_v63 = vpack.c.bf16 %v127_v57, %v126_v55 }
  0x74   :  { %3214 = vmatprep.subr.bf16.mxu0 %v3618_v0  ;;  %2935 = vmatmul.mubr.msk.f32.gmra.mrb[2].mxu0 %vm133_vm1, %v131_v15  ;;  %vm329_vm3 = vcmp.gt.s32.totalorder %v3837_v46, 0  ;;  %v125_v54 = vld [vmem:[#allocation9 + $0x8] sm:$0xff]  ;;  %v3853_v2 = vpack.c.bf16 %v123_v62, %v122_v61  ;;  %v3892_v13 = vld [vmem:[#allocation10] ss:$0 sm:$0xff]  ;;  %vm619_vm6 = vcmp.gt.s32.totalorder %v3837_v46, 1  ;;  %vm923_vm8 = vcmp.gt.s32.totalorder %v3837_v46, 2 }
  0x75   :  { %2942 = vmatmul.mubr.msk.f32.vlgmr.msra.gmra.mrb[0].mxu1 %vm241_vm2, %v231_v14  ;;  %2952 = vmatprep.mubr.msk.f32.mxu0 %vm3619_vm0, %v3620_v1  ;;  %v438_v48 = vsel %vm329_vm3, 1, %v3622_v47  ;;  %v3844_v56 = vpack.c.bf16 %v125_v54, %v124_v53  ;;  %v121_v59 = vld [vmem:[#allocation7 + $0x8] sm:$0xff]  ;;  %v732_v62 = vsel %vm619_vm6, 1, %v3622_v47  ;;  %vm1219_vm10 = vcmp.gt.s32.totalorder %v3837_v46, 3 }
  0x76   :  { %2963 = vmatprep.mubr.msk.f32.mxu1 %vm3619_vm0, %v3620_v1  ;;  %v3846_v60 = vpack.c.bf16 %v121_v59, %v120_v58  ;;  %vm1520_vm12 = vcmp.gt.s32.totalorder %v3837_v46, 4  ;;  %vm1816_vm14 = vcmp.gt.s32.totalorder %v3837_v46, 5  ;;  %vm2737_vm6 = vcmask 785408  }
  0x77   :  { %3216 = vmatpush3.bf16.msra.mxu0 %v3797_v17  ;;  %3219 = vmatpush3.bf16.msra.mxu1 %v3844_v56 }
  0x78   :  { %3223 = vmatprep.subr.bf16.mxu0 %v3618_v0  ;;  %3220 = vmatprep.subr.bf16.mxu1 %v3618_v0 }
  0x7a   :  { %2953 = vmatmul.mubr.f32.vlgmr.msra.gmra.mrb[4].mxu0 %v3620_v1 }
  0x7b   :  { %2974 = vmatprep.mubr.msk.f32.mxu0 %vm3619_vm0, %v3620_v1  ;;  %3225 = vmatpush3.bf16.msra.mxu0 %v3846_v60 }
  0x7c   :  { %3226 = vmatprep.subr.bf16.mxu0 %v3618_v0  ;;  %3222 = vmatpush3.bf16.msra.mxu1 %v3849_v63 }
  0x7d   :  { %3229 = vmatprep.subr.bf16.mxu1 %v3618_v0 }
  0x7f   :  { %3228 = vmatpush3.bf16.msra.mxu0 %v3853_v2  ;;  %2964 = vmatmul.mubr.f32.vlgmr.msra.gmra.mrb[2].mxu1 %v3620_v1 }
  0x80   :  { %3235 = vmatprep.subr.bf16.mxu0 %v3618_v0  ;;  %3231 = vmatpush3.bf16.msra.mxu1 %v3784_v11 }
  0x81   :  { %2985 = vmatprep.mubr.msk.f32.mxu1 %vm3619_vm0, %v3620_v1  ;;  %3232 = vmatprep.subr.bf16.mxu1 %v3618_v0 }
  0x84   :  { %3234 = vmatpush3.bf16.msra.mxu1 %v3797_v17 }
  0x85   :  { %3241 = vmatprep.subr.bf16.mxu1 %v3618_v0 }
  0xe4   :  { %v3819_v29 = vpop.permute.xlu0 %412 }
 0x143   :  { %v2933_v18 = vpop.f32.mrb[0].mxu0 }
 0x144   :  { %v212_v19 = vpop.f32.mrb[1].mxu0 }
 0x147   :  { %v2936_v22 = vpop.f32.mrb[2].mxu0 }
 0x148   :  { %v311_v21 = vpop.f32.mrb[0].mxu1  ;;  %v222_v24 = vpop.f32.mrb[3].mxu0 }
 0x149   :  { %v312_v23 = vadd.f32 %v2759_v20, %v311_v21  ;;  %v2943_v25 = vpop.f32.mrb[1].mxu1 }
 0x14b   :  { %v621_v26 = vrot.slane %v312_v23, 4  ;;  %v3815_v27 = vadd.f32 %v2936_v22, %v312_v23  ;;  %v3817_v28 = vadd.f32 %v312_v23, %v222_v24  ;;  %v330_v30 = vadd.f32 %v312_v23, %v212_v19 }
 0x14c   :  { %v3821_v31 = vadd.f32 %v2933_v18, %v312_v23 }
 0x14d   :  { %v3823_v32 = vadd.f32 %v2936_v22, %v621_v26  ;;  %v3825_v33 = vadd.f32 %v621_v26, %v222_v24  ;;  %v401_v34 = vpop.f32.mrb[4].mxu0  ;;  %v3827_v35 = vadd.f32 %v621_v26, %v212_v19  ;;  %v3829_v36 = vadd.f32 %v2933_v18, %v621_v26 }
 0x14e   :  { %v415_v37 = vadd.f32 %v3819_v29, %v401_v34  ;;  %v2954_v38 = vpop.f32.mrb[5].mxu0  ;;  %v405_v39 = vadd.f32 %v401_v34, %v330_v30 }
 0x150   :  { %417 = vrot.lane.b32.xlu0 %v415_v37, %s3621_s17  ;;  %v2763_v40 = vmul.f32 -1.442695, %v405_v39 }
 0x152   :  { %3372 = vpow2.f32 %v2763_v40  ;;  %v510_v9 = vpop.f32.mrb[2].mxu1 }
 0x153   :  { %v2965_v10 = vpop.f32.mrb[3].mxu1 }
 0x154   :  { %440 = vperm.xlu0 %3370, %v438_v48  }
 0x15c   :  { %v3373_v41 = vpop.eup %3372 }
 0x15d   :  { %v409_v42 = vadd.f32 1.0, %v3373_v41 }
 0x15f   :  { %3374 = vrcp.f32 %v409_v42 }
 0x169   :  { %v3375_v43 = vpop.eup %3374 }
 0x1c2   :  { %v418_v44 = vpop.permute.xlu0 %417 }
 0x1c3   :  { %v420_v45 = vmul.f32 %v3375_v43, %v418_v44 }
 0x1c5   :  { %422 = vrot.lane.b32.xlu1 %v420_v45, %s3621_s17 }
 0x1d3   :  { %v3868_v5 = vpop.permute.xlu0 %440 }
 0x1d4   :  { %vm442_vm4 = vcmp.eq.s32.totalorder %v3868_v5, 1 }
 0x237   :  { %v423_v49 = vpop.permute.xlu1 %422 }
 0x238   :  { %v425_v50 = vadd.f32 %v423_v49, %v330_v30 }
 0x23a   :  { %3376 = vtanh.f32 %v425_v50 }
 0x244   :  { %v3377_v51 = vpop.eup %3376 }
 0x245   :  { %v427_v52 = vsub.f32 0.0, %v3377_v51 }
 0x247   :  { %429 = vrot.lane.b32.xlu1 %v427_v52, %s3623_s1 }
 0x2b9   :  { %v430_v3 = vpop.permute.xlu1 %429 }
 0x2ba   :  { %v432_v4 = vmul.f32 %v3375_v43, %v430_v3 }
 0x2bc   :  { %434 = vrot.lane.b32.xlu1 %v432_v4, %s3624_s23 }
 0x32e   :  { %v435_v6 = vpop.permute.xlu1 %434 }
 0x32f   :  { %v437_v7 = vadd.f32 %v3377_v51, %v435_v6 }
 0x331   :  { %v443_v8 = vsel %vm442_vm4, %v437_v7, 0.0 }
 0x332   :  { %515 = vrot.lane.b32.xlu1 %v443_v8, %s3621_s17 }
 0x3a4   :  { %v3874_v12 = vpop.permute.xlu1 %515 }
 0x3a5   :  { %2975 = vmatmul.mubr.msk.f32.vlgmr.msra.gmra.mrb[6].mxu0 %vm331_vm5, %v3874_v12  ;;  %2986 = vmatmul.mubr.msk.f32.vlgmr.msra.gmra.mrb[4].mxu1 %vm331_vm5, %v3874_v12 }
 0x3a6   :  { %3237 = vmatpush3.bf16.msra.mxu0 %v3844_v56  ;;  %2996 = vmatprep.mubr.msk.f32.mxu0 %vm3619_vm0, %v3620_v1 }
 0x3a7   :  { %3238 = vmatprep.subr.bf16.mxu0 %v3618_v0  ;;  %3243 = vmatpush3.bf16.msra.mxu1 %v3846_v60 }
 0x3a8   :  { %3244 = vmatprep.subr.bf16.mxu1 %v3618_v0  ;;  %3007 = vmatprep.mubr.msk.f32.mxu1 %vm3619_vm0, %v3620_v1 }
 0x3aa   :  { %3240 = vmatpush3.bf16.msra.mxu0 %v3849_v63 }
 0x3ab   :  { %3247 = vmatprep.subr.bf16.mxu0 %v3618_v0  ;;  %3246 = vmatpush3.bf16.msra.mxu1 %v3853_v2 }
 0x3ac   :  { %3253 = vmatprep.subr.bf16.mxu1 %v3618_v0 }
 0x478   :  { %v585_v14 = vpop.f32.mrb[6].mxu0  ;;  %v690_v15 = vpop.f32.mrb[4].mxu1 }
 0x479   :  { %v586_v16 = vadd.f32 %v585_v14, %v510_v9  ;;  %v704_v18 = vadd.f32 %v690_v15, %v3819_v29  ;;  %v2976_v19 = vpop.f32.mrb[7].mxu0  ;;  %v2987_v20 = vpop.f32.mrb[5].mxu1  ;;  %v695_v23 = vrot.slane %v690_v15, 4 }
 0x47b   :  { %v589_v21 = vadd.f32 %v3892_v13, %v586_v16  ;;  %v706_v22 = vrot.slane %v704_v18, 4  ;;  %v697_v24 = vadd.f32 %v695_v23, %v3827_v35 }
 0x47d   :  { %707 = vrot.lane.b32.xlu1 %v706_v22, %s3621_s17  ;;  %597 = vrot.lane.b32.xlu0 %v589_v21, %s3624_s23  ;;  %v2765_v25 = vmul.f32 -1.442695, %v589_v21  ;;  %v2767_v26 = vmul.f32 -1.442695, %v697_v24 }
 0x47f   :  { %3378 = vpow2.f32 %v2765_v25 }
 0x480   :  { %3380 = vpow2.f32 %v2767_v26 }
 0x489   :  { %v3379_v30 = vpop.eup %3378 }
 0x48a   :  { %v3381_v34 = vpop.eup %3380  ;;  %v593_v37 = vadd.f32 1.0, %v3379_v30 }
 0x48b   :  { %v701_v38 = vadd.f32 1.0, %v3381_v34 }
 0x48c   :  { %3382 = vrcp.f32 %v593_v37 }
 0x48d   :  { %3384 = vrcp.f32 %v701_v38 }
 0x496   :  { %v3383_v39 = vpop.eup %3382 }
 0x497   :  { %v3385_v40 = vpop.eup %3384 }
 0x4ef   :  { %v708_v41 = vpop.permute.xlu1 %707  ;;  %v598_v42 = vpop.permute.xlu0 %597 }
 0x4f0   :  { %v710_v43 = vmul.f32 %v3385_v40, %v708_v41  ;;  %v600_v44 = vmul.f32 %v3383_v39, %v598_v42 }
 0x4f2   :  { %712 = vrot.lane.b32.xlu1 %v710_v43, %s3621_s17  ;;  %602 = vrot.lane.b32.xlu0 %v600_v44, %s3621_s17 }
 0x564   :  { %v713_v45 = vpop.permute.xlu1 %712  ;;  %v603_v48 = vpop.permute.xlu0 %602 }
 0x565   :  { %v715_v49 = vadd.f32 %v713_v45, %v3827_v35  ;;  %v605_v50 = vadd.f32 %v603_v48, %v589_v21 }
 0x567   :  { %3386 = vtanh.f32 %v715_v49 }
 0x568   :  { %3388 = vtanh.f32 %v605_v50 }
 0x571   :  { %v3387_v51 = vpop.eup %3386 }
 0x572   :  { %v3389_v52 = vpop.eup %3388  ;;  %v718_v53 = vrot.slane %v3387_v51, 4 }
 0x573   :  { %v607_v54 = vsub.f32 0.0, %v3389_v52 }
 0x574   :  { %v720_v55 = vsub.f32 %v443_v8, %v718_v53 }
 0x575   :  { %609 = vrot.lane.b32.xlu0 %v607_v54, %s3623_s1 }
 0x576   :  { %v722_v57 = vrot.slane %v720_v55, 4 }
 0x578   :  { %723 = vrot.lane.b32.xlu1 %v722_v57, %s3623_s1 }
 0x5e7   :  { %v610_v58 = vpop.permute.xlu0 %609 }
 0x5e8   :  { %v612_v59 = vmul.f32 %v3383_v39, %v610_v58 }
 0x5ea   :  { %614 = vrot.lane.b32.xlu0 %v612_v59, %s3624_s23  ;;  %v724_v35 = vpop.permute.xlu1 %723 }
 0x5eb   :  { %v726_v61 = vmul.f32 %v3385_v40, %v724_v35 }
 0x5ed   :  { %728 = vrot.lane.b32.xlu1 %v726_v61, %s3624_s23 }
 0x5ee   :  { %734 = vperm.xlu0 %3370, %v732_v62  }
 0x65c   :  { %v615_v3 = vpop.permute.xlu0 %614 }
 0x65d   :  { %v617_v4 = vadd.f32 %v3389_v52, %v615_v3 }
 0x65f   :  { %v729_v6 = vpop.permute.xlu1 %728  ;;  %v3910_v7 = vsel %vm442_vm4, %v617_v4, 0.0  ;;  %vm2735_vm4 = vcmask 523264  }
 0x660   :  { %v731_v8 = vadd.f32 %v3387_v51, %v729_v6  ;;  %745 = vrot.lane.b32.xlu1 %v3910_v7, %s3621_s17 }
 0x662   :  { %v738_v9 = vrot.slane %v731_v8, 4 }
 0x664   :  { %739 = vrot.lane.b32.xlu0 %v738_v9, %s3621_s17 }
 0x66d   :  { %v3915_v10 = vpop.permute.xlu0 %734 }
 0x66e   :  { %vm736_vm7 = vcmp.eq.s32.totalorder %v3915_v10, 1 }
 0x6d2   :  { %v3917_v14 = vpop.permute.xlu1 %745 }
 0x6d3   :  { %2997 = vmatmul.mubr.msk.f32.vlgmr.msra.gmra.mrb[8].mxu0 %vm331_vm5, %v3917_v14 }
 0x6d4   :  { %3249 = vmatpush3.bf16.msra.mxu0 %v3784_v11  ;;  %3018 = vmatprep.mubr.msk.f32.mxu0 %vm3619_vm0, %v3620_v1 }
 0x6d5   :  { %3250 = vmatprep.subr.bf16.mxu0 %v3618_v0 }
 0x6d6   :  { %v740_v5 = vpop.permute.xlu0 %739 }
 0x6d7   :  { %v3929_v15 = vsel %vm736_vm7, %v740_v5, %v3874_v12 }
 0x6d8   :  { %3252 = vmatpush3.bf16.msra.mxu0 %v3797_v17  ;;  %3008 = vmatmul.mubr.msk.f32.vlgmr.msra.gmra.mrb[6].mxu1 %vm331_vm5, %v3929_v15 }
 0x6d9   :  { %3255 = vmatpush3.bf16.msra.mxu1 %v3844_v56  ;;  %3029 = vmatprep.mubr.msk.f32.mxu1 %vm3619_vm0, %v3620_v1 }
 0x6da   :  { %3256 = vmatprep.subr.bf16.mxu1 %v3618_v0  ;;  %3259 = vmatprep.subr.bf16.mxu0 %v3618_v0 }
 0x6db   :  { %3019 = vmatmul.mubr.msk.f32.vlgmr.msra.gmra.mrb[10].mxu0 %vm331_vm5, %v3929_v15 }
 0x6dc   :  { %3261 = vmatpush3.bf16.msra.mxu0 %v3846_v60  ;;  %3040 = vmatprep.mubr.msk.f32.mxu0 %vm3619_vm0, %v3620_v1 }
 0x6dd   :  { %3258 = vmatpush3.bf16.msra.mxu1 %v3849_v63  ;;  %3262 = vmatprep.subr.bf16.mxu0 %v3618_v0 }
 0x6de   :  { %3265 = vmatprep.subr.bf16.mxu1 %v3618_v0 }
 0x6e0   :  { %3264 = vmatpush3.bf16.msra.mxu0 %v3853_v2 }
 0x6e1   :  { %3271 = vmatprep.subr.bf16.mxu0 %v3618_v0 }
 0x7a6   :  { %v815_v12 = vpop.f32.mrb[8].mxu0 }
 0x7a7   :  { %v2998_v16 = vpop.f32.mrb[9].mxu0 }
 0x7ab   :  { %v888_v18 = vpop.f32.mrb[6].mxu1 }
 0x7ac   :  { %v889_v19 = vadd.f32 %v888_v18, %v815_v12  ;;  %v3009_v20 = vpop.f32.mrb[7].mxu1 }
 0x7ae   :  { %v892_v21 = vadd.f32 %v3892_v13, %v889_v19  ;;  %v991_v22 = vpop.f32.mrb[10].mxu0 }
 0x7af   :  { %v1002_v23 = vadd.f32 %v991_v22, %v3819_v29  ;;  %v3020_v24 = vpop.f32.mrb[11].mxu0  ;;  %v995_v25 = vadd.f32 %v991_v22, %v3821_v31 }
 0x7b0   :  { %900 = vrot.lane.b32.xlu0 %v892_v21, %s3624_s23  ;;  %v2770_v26 = vmul.f32 -1.442695, %v892_v21 }
 0x7b1   :  { %1004 = vrot.lane.b32.xlu1 %v1002_v23, %s3621_s17  ;;  %v2772_v30 = vmul.f32 -1.442695, %v995_v25 }
 0x7b2   :  { %3390 = vpow2.f32 %v2770_v26 }
 0x7b3   :  { %3392 = vpow2.f32 %v2772_v30 }
 0x7bc   :  { %v3391_v34 = vpop.eup %3390 }
 0x7bd   :  { %v3393_v37 = vpop.eup %3392  ;;  %v896_v38 = vadd.f32 1.0, %v3391_v34 }
 0x7be   :  { %v999_v39 = vadd.f32 1.0, %v3393_v37 }
 0x7bf   :  { %3394 = vrcp.f32 %v896_v38 }
 0x7c0   :  { %3396 = vrcp.f32 %v999_v39 }
 0x7c9   :  { %v3395_v40 = vpop.eup %3394 }
 0x7ca   :  { %v3397_v42 = vpop.eup %3396 }
 0x822   :  { %v901_v41 = vpop.permute.xlu0 %900 }
 0x823   :  { %v1005_v43 = vpop.permute.xlu1 %1004  ;;  %v903_v44 = vmul.f32 %v3395_v40, %v901_v41 }
 0x824   :  { %v1007_v45 = vmul.f32 %v3397_v42, %v1005_v43 }
 0x825   :  { %905 = vrot.lane.b32.xlu0 %v903_v44, %s3621_s17 }
 0x826   :  { %1009 = vrot.lane.b32.xlu1 %v1007_v45, %s3621_s17 }
 0x897   :  { %v906_v48 = vpop.permute.xlu0 %905 }
 0x898   :  { %v1010_v49 = vpop.permute.xlu1 %1009  ;;  %v908_v50 = vadd.f32 %v906_v48, %v892_v21 }
 0x899   :  { %v1012_v51 = vadd.f32 %v1010_v49, %v3821_v31  ;;  %v1029_v31 = vsel %vm923_vm8, 1, %v3622_v47 }
 0x89a   :  { %3398 = vtanh.f32 %v908_v50 }
 0x89b   :  { %3400 = vtanh.f32 %v1012_v51 }
 0x8a4   :  { %v3399_v52 = vpop.eup %3398 }
 0x8a5   :  { %v3401_v53 = vpop.eup %3400  ;;  %v910_v54 = vsub.f32 %v3910_v7, %v3399_v52 }
 0x8a6   :  { %1015 = vrot.lane.b32.xlu1 %v3401_v53, %s3621_s17 }
 0x8a7   :  { %912 = vrot.lane.b32.xlu0 %v910_v54, %s3623_s1 }
 0x918   :  { %v1016_v55 = vpop.permute.xlu1 %1015 }
 0x919   :  { %v1018_v57 = vsub.f32 %v3929_v15, %v1016_v55  ;;  %v913_v58 = vpop.permute.xlu0 %912 }
 0x91a   :  { %v915_v59 = vmul.f32 %v3395_v40, %v913_v58 }
 0x91b   :  { %1020 = vrot.lane.b32.xlu1 %v1018_v57, %s3624_s23 }
 0x91c   :  { %917 = vrot.lane.b32.xlu0 %v915_v59, %s3624_s23 }
 0x91f   :  { %1031 = vperm.xlu1 %3371, %v1029_v31  }
 0x923   :  { %1034 = vrot.lane.b32.xlu1 %v3929_v15, %s3621_s17 }
 0x98d   :  { %v1021_v35 = vpop.permute.xlu1 %1020 }
 0x98e   :  { %v1023_v61 = vmul.f32 %v3397_v42, %v1021_v35  ;;  %v918_v62 = vpop.permute.xlu0 %917 }
 0x98f   :  { %v3967_v3 = vadd.f32 %v3399_v52, %v918_v62 }
 0x990   :  { %1025 = vrot.lane.b32.xlu0 %v1023_v61, %s3624_s23 }
 0x991   :  { %v3974_v4 = vsel %vm736_vm7, %v3967_v3, %v3910_v7 }
 0x994   :  { %1039 = vrot.lane.b32.xlu0 %v3974_v4, %s3621_s17 }
 0x99e   :  { %v3978_v6 = vpop.permute.xlu1 %1031 }
 0x99f   :  { %vm1033_vm9 = vcmp.eq.s32.totalorder %v3978_v6, 1 }
 0x9a2   :  { %v1035_v5 = vpop.permute.xlu1 %1034 }
 0xa02   :  { %v1026_v8 = vpop.permute.xlu0 %1025 }
 0xa03   :  { %v1028_v9 = vadd.f32 %v3401_v53, %v1026_v8 }
 0xa05   :  { %v3983_v15 = vsel %vm1033_vm9, %v1028_v9, %v1035_v5  ;;  %v1329_v9 = vsel %vm1219_vm10, 1, %v3622_v47 }
 0xa06   :  { %v1040_v12 = vpop.permute.xlu0 %1039  ;;  %1114 = vrot.lane.b32.xlu1 %v3983_v15, %s3621_s17 }
 0xa07   :  { %3030 = vmatmul.mubr.msk.f32.vlgmr.msra.gmra.mrb[8].mxu1 %vm331_vm5, %v1040_v12 }
 0xa08   :  { %3267 = vmatpush3.bf16.msra.mxu1 %v3784_v11  ;;  %3051 = vmatprep.mubr.msk.f32.mxu1 %vm3619_vm0, %v3620_v1 }
 0xa09   :  { %3268 = vmatprep.subr.bf16.mxu1 %v3618_v0 }
 0xa0c   :  { %3270 = vmatpush3.bf16.msra.mxu1 %v3797_v17 }
 0xa0d   :  { %3277 = vmatprep.subr.bf16.mxu1 %v3618_v0 }
 0xa78   :  { %v3994_v7 = vpop.permute.xlu1 %1114 }
 0xa79   :  { %3041 = vmatmul.mubr.msk.f32.vlgmr.msra.gmra.mrb[12].mxu0 %vm331_vm5, %v3994_v7  ;;  %3052 = vmatmul.mubr.msk.f32.vlgmr.msra.gmra.mrb[10].mxu1 %vm331_vm5, %v3994_v7 }
 0xa7a   :  { %3273 = vmatpush3.bf16.msra.mxu0 %v3844_v56  ;;  %3062 = vmatprep.mubr.msk.f32.mxu0 %vm3619_vm0, %v3620_v1 }
 0xa7b   :  { %3274 = vmatprep.subr.bf16.mxu0 %v3618_v0  ;;  %3279 = vmatpush3.bf16.msra.mxu1 %v3846_v60 }
 0xa7c   :  { %3280 = vmatprep.subr.bf16.mxu1 %v3618_v0  ;;  %3073 = vmatprep.mubr.msk.f32.mxu1 %vm3619_vm0, %v3620_v1 }
 0xa7e   :  { %3276 = vmatpush3.bf16.msra.mxu0 %v3849_v63 }
 0xa7f   :  { %3283 = vmatprep.subr.bf16.mxu0 %v3618_v0  ;;  %3282 = vmatpush3.bf16.msra.mxu1 %v3853_v2 }
 0xa80   :  { %3289 = vmatprep.subr.bf16.mxu1 %v3618_v0 }
 0xada   :  { %v1109_v16 = vpop.f32.mrb[8].mxu1 }
 0xadb   :  { %v3031_v18 = vpop.f32.mrb[9].mxu1 }
 0xb4c   :  { %v1184_v19 = vpop.f32.mrb[12].mxu0  ;;  %v1287_v20 = vpop.f32.mrb[10].mxu1 }
 0xb4d   :  { %v1185_v21 = vadd.f32 %v1184_v19, %v1109_v16  ;;  %v1301_v22 = vadd.f32 %v1287_v20, %v3819_v29  ;;  %v3042_v23 = vpop.f32.mrb[13].mxu0  ;;  %v3053_v24 = vpop.f32.mrb[11].mxu1  ;;  %v1292_v30 = vrot.slane %v1287_v20, 4 }
 0xb4f   :  { %v1188_v25 = vadd.f32 %v3892_v13, %v1185_v21  ;;  %v1303_v26 = vrot.slane %v1301_v22, 4  ;;  %v1294_v34 = vadd.f32 %v1292_v30, %v3829_v36 }
 0xb51   :  { %1304 = vrot.lane.b32.xlu1 %v1303_v26, %s3621_s17  ;;  %1196 = vrot.lane.b32.xlu0 %v1188_v25, %s3624_s23  ;;  %v2775_v37 = vmul.f32 -1.442695, %v1188_v25  ;;  %v2777_v38 = vmul.f32 -1.442695, %v1294_v34 }
 0xb53   :  { %3402 = vpow2.f32 %v2775_v37 }
 0xb54   :  { %3404 = vpow2.f32 %v2777_v38 }
 0xb5d   :  { %v3403_v39 = vpop.eup %3402 }
 0xb5e   :  { %v3405_v40 = vpop.eup %3404  ;;  %v1192_v41 = vadd.f32 1.0, %v3403_v39 }
 0xb5f   :  { %v1298_v42 = vadd.f32 1.0, %v3405_v40 }
 0xb60   :  { %3406 = vrcp.f32 %v1192_v41 }
 0xb61   :  { %3408 = vrcp.f32 %v1298_v42 }
 0xb6a   :  { %v3407_v43 = vpop.eup %3406 }
 0xb6b   :  { %v3409_v44 = vpop.eup %3408 }
 0xbc3   :  { %v1305_v45 = vpop.permute.xlu1 %1304  ;;  %v1197_v48 = vpop.permute.xlu0 %1196 }
 0xbc4   :  { %v1307_v49 = vmul.f32 %v3409_v44, %v1305_v45  ;;  %v1199_v50 = vmul.f32 %v3407_v43, %v1197_v48 }
 0xbc6   :  { %1309 = vrot.lane.b32.xlu1 %v1307_v49, %s3621_s17  ;;  %1201 = vrot.lane.b32.xlu0 %v1199_v50, %s3621_s17 }
 0xc38   :  { %v1310_v51 = vpop.permute.xlu1 %1309  ;;  %v1202_v52 = vpop.permute.xlu0 %1201 }
 0xc39   :  { %v1312_v53 = vadd.f32 %v1310_v51, %v3829_v36  ;;  %v1204_v54 = vadd.f32 %v1202_v52, %v1188_v25 }
 0xc3b   :  { %3410 = vtanh.f32 %v1312_v53 }
 0xc3c   :  { %3412 = vtanh.f32 %v1204_v54 }
 0xc45   :  { %v3411_v55 = vpop.eup %3410 }
 0xc46   :  { %v3413_v57 = vpop.eup %3412  ;;  %v1315_v58 = vrot.slane %v3411_v55, 4 }
 0xc47   :  { %v1206_v59 = vsub.f32 %v3974_v4, %v3413_v57 }
 0xc48   :  { %v1317_v31 = vsub.f32 %v3983_v15, %v1315_v58 }
 0xc49   :  { %1208 = vrot.lane.b32.xlu0 %v1206_v59, %s3623_s1 }
 0xc4a   :  { %v1319_v35 = vrot.slane %v1317_v31, 4 }
 0xc4c   :  { %1320 = vrot.lane.b32.xlu1 %v1319_v35, %s3623_s1 }
 0xcbb   :  { %v1209_v61 = vpop.permute.xlu0 %1208 }
 0xcbc   :  { %v1211_v62 = vmul.f32 %v3407_v43, %v1209_v61 }
 0xcbe   :  { %1213 = vrot.lane.b32.xlu0 %v1211_v62, %s3624_s23  ;;  %v1321_v36 = vpop.permute.xlu1 %1320 }
 0xcbf   :  { %v1323_v8 = vmul.f32 %v3409_v44, %v1321_v36 }
 0xcc1   :  { %1325 = vrot.lane.b32.xlu1 %v1323_v8, %s3624_s23 }
 0xcc2   :  { %1331 = vperm.xlu0 %3370, %v1329_v9  }
 0xd30   :  { %v1214_v5 = vpop.permute.xlu0 %1213 }
 0xd31   :  { %v4028_v15 = vadd.f32 %v3413_v57, %v1214_v5 }
 0xd33   :  { %v1326_v12 = vpop.permute.xlu1 %1325  ;;  %v4034_v16 = vsel %vm1033_vm9, %v4028_v15, %v3974_v4 }
 0xd34   :  { %v1328_v18 = vadd.f32 %v3411_v55, %v1326_v12  ;;  %1342 = vrot.lane.b32.xlu1 %v4034_v16, %s3621_s17 }
 0xd36   :  { %v1335_v19 = vrot.slane %v1328_v18, 4 }
 0xd38   :  { %1336 = vrot.lane.b32.xlu0 %v1335_v19, %s3621_s17 }
 0xd41   :  { %v4039_v20 = vpop.permute.xlu0 %1331 }
 0xd42   :  { %vm1333_vm11 = vcmp.eq.s32.totalorder %v4039_v20, 1 }
 0xda6   :  { %v1343_v21 = vpop.permute.xlu1 %1342 }
 0xda7   :  { %3063 = vmatmul.mubr.msk.f32.vlgmr.msra.gmra.mrb[14].mxu0 %vm331_vm5, %v1343_v21 }
 0xda8   :  { %3285 = vmatpush3.bf16.msra.mxu0 %v3784_v11  ;;  %3084 = vmatprep.mubr.msk.f32.mxu0 %vm3619_vm0, %v3620_v1 }
 0xda9   :  { %3286 = vmatprep.subr.bf16.mxu0 %v3618_v0 }
 0xdaa   :  { %v1337_v4 = vpop.permute.xlu0 %1336 }
 0xdab   :  { %v4050_v22 = vsel %vm1333_vm11, %v1337_v4, %v3994_v7 }
 0xdac   :  { %3288 = vmatpush3.bf16.msra.mxu0 %v3797_v17  ;;  %3074 = vmatmul.mubr.msk.f32.vlgmr.msra.gmra.mrb[12].mxu1 %vm331_vm5, %v4050_v22 }
 0xdad   :  { %3291 = vmatpush3.bf16.msra.mxu1 %v3844_v56  ;;  %3095 = vmatprep.mubr.msk.f32.mxu1 %vm3619_vm0, %v3620_v1 }
 0xdae   :  { %3292 = vmatprep.subr.bf16.mxu1 %v3618_v0  ;;  %3295 = vmatprep.subr.bf16.mxu0 %v3618_v0 }
 0xdaf   :  { %3085 = vmatmul.mubr.msk.f32.vlgmr.msra.gmra.mrb[16].mxu0 %vm331_vm5, %v4050_v22 }
 0xdb0   :  { %3297 = vmatpush3.bf16.msra.mxu0 %v3846_v60  ;;  %3106 = vmatprep.mubr.msk.f32.mxu0 %vm3619_vm0, %v3620_v1 }
 0xdb1   :  { %3294 = vmatpush3.bf16.msra.mxu1 %v3849_v63  ;;  %3298 = vmatprep.subr.bf16.mxu0 %v3618_v0 }
 0xdb2   :  { %3301 = vmatprep.subr.bf16.mxu1 %v3618_v0 }
 0xdb4   :  { %3300 = vmatpush3.bf16.msra.mxu0 %v3853_v2 }
 0xdb5   :  { %3307 = vmatprep.subr.bf16.mxu0 %v3618_v0 }
 0xe7a   :  { %v1412_v7 = vpop.f32.mrb[14].mxu0 }
 0xe7b   :  { %v3064_v23 = vpop.f32.mrb[15].mxu0 }
 0xe7f   :  { %v1485_v24 = vpop.f32.mrb[12].mxu1 }
 0xe80   :  { %v1486_v25 = vadd.f32 %v1485_v24, %v1412_v7  ;;  %v3075_v26 = vpop.f32.mrb[13].mxu1 }
 0xe82   :  { %v1489_v30 = vadd.f32 %v3892_v13, %v1486_v25  ;;  %v1588_v34 = vpop.f32.mrb[16].mxu0 }
 0xe83   :  { %v1599_v37 = vadd.f32 %v1588_v34, %v3819_v29  ;;  %v3086_v38 = vpop.f32.mrb[17].mxu0  ;;  %v1592_v39 = vadd.f32 %v1588_v34, %v3817_v28 }
 0xe84   :  { %1497 = vrot.lane.b32.xlu0 %v1489_v30, %s3624_s23  ;;  %v2780_v40 = vmul.f32 -1.442695, %v1489_v30 }
 0xe85   :  { %1601 = vrot.lane.b32.xlu1 %v1599_v37, %s3621_s17  ;;  %v2782_v41 = vmul.f32 -1.442695, %v1592_v39 }
 0xe86   :  { %3414 = vpow2.f32 %v2780_v40 }
 0xe87   :  { %3416 = vpow2.f32 %v2782_v41 }
 0xe90   :  { %v3415_v42 = vpop.eup %3414 }
 0xe91   :  { %v3417_v43 = vpop.eup %3416  ;;  %v1493_v44 = vadd.f32 1.0, %v3415_v42 }
 0xe92   :  { %v1596_v45 = vadd.f32 1.0, %v3417_v43 }
 0xe93   :  { %3418 = vrcp.f32 %v1493_v44 }
 0xe94   :  { %3420 = vrcp.f32 %v1596_v45 }
 0xe9d   :  { %v3419_v48 = vpop.eup %3418 }
 0xe9e   :  { %v3421_v50 = vpop.eup %3420 }
 0xef6   :  { %v1498_v49 = vpop.permute.xlu0 %1497 }
 0xef7   :  { %v1602_v51 = vpop.permute.xlu1 %1601  ;;  %v1500_v52 = vmul.f32 %v3419_v48, %v1498_v49 }
 0xef8   :  { %v1604_v53 = vmul.f32 %v3421_v50, %v1602_v51 }
 0xef9   :  { %1502 = vrot.lane.b32.xlu0 %v1500_v52, %s3621_s17 }
 0xefa   :  { %1606 = vrot.lane.b32.xlu1 %v1604_v53, %s3621_s17 }
 0xf6b   :  { %v1503_v54 = vpop.permute.xlu0 %1502 }
 0xf6c   :  { %v1607_v55 = vpop.permute.xlu1 %1606  ;;  %v1505_v57 = vadd.f32 %v1503_v54, %v1489_v30 }
 0xf6d   :  { %v1609_v58 = vadd.f32 %v1607_v55, %v3817_v28  ;;  %v1626_v28 = vsel %vm1520_vm12, 1, %v3622_v47 }
 0xf6e   :  { %3422 = vtanh.f32 %v1505_v57 }
 0xf6f   :  { %3424 = vtanh.f32 %v1609_v58 }
 0xf78   :  { %v3423_v59 = vpop.eup %3422 }
 0xf79   :  { %v3425_v31 = vpop.eup %3424  ;;  %v1507_v35 = vsub.f32 %v4034_v16, %v3423_v59 }
 0xf7a   :  { %1612 = vrot.lane.b32.xlu1 %v3425_v31, %s3621_s17 }
 0xf7b   :  { %1509 = vrot.lane.b32.xlu0 %v1507_v35, %s3623_s1 }
 0xfec   :  { %v1613_v61 = vpop.permute.xlu1 %1612 }
 0xfed   :  { %v1615_v62 = vsub.f32 %v4050_v22, %v1613_v61  ;;  %v1510_v36 = vpop.permute.xlu0 %1509 }
 0xfee   :  { %v1512_v8 = vmul.f32 %v3419_v48, %v1510_v36 }
 0xfef   :  { %1617 = vrot.lane.b32.xlu1 %v1615_v62, %s3624_s23 }
 0xff0   :  { %1514 = vrot.lane.b32.xlu0 %v1512_v8, %s3624_s23 }
 0xff3   :  { %1628 = vperm.xlu1 %3371, %v1626_v28  }
 0xff7   :  { %1631 = vrot.lane.b32.xlu1 %v4050_v22, %s3621_s17 }
0x1061   :  { %v1618_v9 = vpop.permute.xlu1 %1617 }
0x1062   :  { %v1620_v5 = vmul.f32 %v3421_v50, %v1618_v9  ;;  %v1515_v12 = vpop.permute.xlu0 %1514 }
0x1063   :  { %v4088_v18 = vadd.f32 %v3423_v59, %v1515_v12 }
0x1064   :  { %1622 = vrot.lane.b32.xlu0 %v1620_v5, %s3624_s23 }
0x1065   :  { %v4095_v19 = vsel %vm1333_vm11, %v4088_v18, %v4034_v16  ;;  %v1519_v10 = vsel %vm1333_vm11, %v4088_v18, 0.0  ;;  %v1218_v18 = vsel %vm1033_vm9, %v4028_v15, 0.0 }
0x1068   :  { %1636 = vrot.lane.b32.xlu0 %v4095_v19, %s3621_s17 }
0x1072   :  { %v4099_v21 = vpop.permute.xlu1 %1628 }
0x1073   :  { %vm1630_vm13 = vcmp.eq.s32.totalorder %v4099_v21, 1 }
0x1076   :  { %v1632_v7 = vpop.permute.xlu1 %1631 }
0x10d6   :  { %v1623_v4 = vpop.permute.xlu0 %1622 }
0x10d7   :  { %v1625_v22 = vadd.f32 %v3425_v31, %v1623_v4 }
0x10d9   :  { %v4104_v23 = vsel %vm1630_vm13, %v1625_v22, %v1632_v7 }
0x10da   :  { %v1637_v24 = vpop.permute.xlu0 %1636  ;;  %1711 = vrot.lane.b32.xlu1 %v4104_v23, %s3621_s17 }
0x10db   :  { %3096 = vmatmul.mubr.msk.f32.vlgmr.msra.gmra.mrb[14].mxu1 %vm331_vm5, %v1637_v24  ;;  %v1926_v24 = vsel %vm1816_vm14, 1, %v3622_v47 }
0x10dc   :  { %3303 = vmatpush3.bf16.msra.mxu1 %v3784_v11  ;;  %3117 = vmatprep.mubr.msk.f32.mxu1 %vm3619_vm0, %v3620_v1 }
0x10dd   :  { %3304 = vmatprep.subr.bf16.mxu1 %v3618_v0 }
0x10e0   :  { %3306 = vmatpush3.bf16.msra.mxu1 %v3797_v17 }
0x10e1   :  { %3313 = vmatprep.subr.bf16.mxu1 %v3618_v0 }
0x114c   :  { %v4115_v16 = vpop.permute.xlu1 %1711 }
0x114d   :  { %3107 = vmatmul.mubr.msk.f32.vlgmr.msra.gmra.mrb[18].mxu0 %vm331_vm5, %v4115_v16  ;;  %3118 = vmatmul.mubr.msk.f32.vlgmr.msra.gmra.mrb[16].mxu1 %vm331_vm5, %v4115_v16 }
0x114e   :  { %3309 = vmatpush3.bf16.msra.mxu0 %v3844_v56  ;;  %3128 = vmatprep.mubr.msk.f32.mxu0 %vm3619_vm0, %v3620_v1 }
0x114f   :  { %3310 = vmatprep.subr.bf16.mxu0 %v3618_v0  ;;  %3315 = vmatpush3.bf16.msra.mxu1 %v3846_v60 }
0x1150   :  { %3316 = vmatprep.subr.bf16.mxu1 %v3618_v0  ;;  %3139 = vmatprep.mubr.msk.f32.mxu1 %vm3619_vm0, %v3620_v1 }
0x1152   :  { %3312 = vmatpush3.bf16.msra.mxu0 %v3849_v63 }
0x1153   :  { %3319 = vmatprep.subr.bf16.mxu0 %v3618_v0  ;;  %3318 = vmatpush3.bf16.msra.mxu1 %v3853_v2 }
0x1154   :  { %3325 = vmatprep.subr.bf16.mxu1 %v3618_v0 }
0x11ae   :  { %v1706_v25 = vpop.f32.mrb[14].mxu1 }
0x11af   :  { %v3097_v26 = vpop.f32.mrb[15].mxu1 }
0x1220   :  { %v1781_v30 = vpop.f32.mrb[18].mxu0  ;;  %v1884_v34 = vpop.f32.mrb[16].mxu1 }
0x1221   :  { %v1782_v37 = vadd.f32 %v1781_v30, %v1706_v25  ;;  %v1898_v38 = vadd.f32 %v1884_v34, %v3819_v29  ;;  %v3108_v39 = vpop.f32.mrb[19].mxu0  ;;  %v3119_v40 = vpop.f32.mrb[17].mxu1  ;;  %v1889_v43 = vrot.slane %v1884_v34, 4 }
0x1223   :  { %v1785_v41 = vadd.f32 %v3892_v13, %v1782_v37  ;;  %v1900_v42 = vrot.slane %v1898_v38, 4  ;;  %v1891_v44 = vadd.f32 %v1889_v43, %v3825_v33 }
0x1225   :  { %1901 = vrot.lane.b32.xlu1 %v1900_v42, %s3621_s17  ;;  %1793 = vrot.lane.b32.xlu0 %v1785_v41, %s3624_s23  ;;  %v2785_v45 = vmul.f32 -1.442695, %v1785_v41  ;;  %v2787_v48 = vmul.f32 -1.442695, %v1891_v44 }
0x1227   :  { %3426 = vpow2.f32 %v2785_v45 }
0x1228   :  { %3428 = vpow2.f32 %v2787_v48 }
0x1231   :  { %v3427_v49 = vpop.eup %3426 }
0x1232   :  { %v3429_v50 = vpop.eup %3428  ;;  %v1789_v51 = vadd.f32 1.0, %v3427_v49 }
0x1233   :  { %v1895_v52 = vadd.f32 1.0, %v3429_v50 }
0x1234   :  { %3430 = vrcp.f32 %v1789_v51 }
0x1235   :  { %3432 = vrcp.f32 %v1895_v52 }
0x123e   :  { %v3431_v53 = vpop.eup %3430 }
0x123f   :  { %v3433_v54 = vpop.eup %3432 }
0x1297   :  { %v1902_v55 = vpop.permute.xlu1 %1901  ;;  %v1794_v57 = vpop.permute.xlu0 %1793 }
0x1298   :  { %v1904_v58 = vmul.f32 %v3433_v54, %v1902_v55  ;;  %v1796_v59 = vmul.f32 %v3431_v53, %v1794_v57 }
0x129a   :  { %1906 = vrot.lane.b32.xlu1 %v1904_v58, %s3621_s17  ;;  %1798 = vrot.lane.b32.xlu0 %v1796_v59, %s3621_s17 }
0x130c   :  { %v1907_v31 = vpop.permute.xlu1 %1906  ;;  %v1799_v35 = vpop.permute.xlu0 %1798 }
0x130d   :  { %v1909_v61 = vadd.f32 %v1907_v31, %v3825_v33  ;;  %v1801_v62 = vadd.f32 %v1799_v35, %v1785_v41 }
0x130f   :  { %3434 = vtanh.f32 %v1909_v61 }
0x1310   :  { %3436 = vtanh.f32 %v1801_v62 }
0x1319   :  { %v3435_v36 = vpop.eup %3434 }
0x131a   :  { %v3437_v8 = vpop.eup %3436  ;;  %v1912_v28 = vrot.slane %v3435_v36, 4 }
0x131b   :  { %v1803_v9 = vsub.f32 %v4095_v19, %v3437_v8 }
0x131c   :  { %v1914_v5 = vsub.f32 %v4104_v23, %v1912_v28 }
0x131d   :  { %1805 = vrot.lane.b32.xlu0 %v1803_v9, %s3623_s1 }
0x131e   :  { %v1916_v12 = vrot.slane %v1914_v5, 4 }
0x1320   :  { %1917 = vrot.lane.b32.xlu1 %v1916_v12, %s3623_s1 }
0x138f   :  { %v1806_v4 = vpop.permute.xlu0 %1805 }
0x1390   :  { %v1808_v22 = vmul.f32 %v3431_v53, %v1806_v4 }
0x1392   :  { %1810 = vrot.lane.b32.xlu0 %v1808_v22, %s3624_s23  ;;  %v1918_v33 = vpop.permute.xlu1 %1917 }
0x1393   :  { %v1920_v7 = vmul.f32 %v3433_v54, %v1918_v33 }
0x1395   :  { %1922 = vrot.lane.b32.xlu1 %v1920_v7, %s3624_s23  ;;  %v4206_v7 = vld [vmem:[%s4320_s2] sm:$0xf] }
0x1396   :  { %1928 = vperm.xlu0 %3370, %v1926_v24   ;;  %vm2117_vm1 = vcmp.gt.s32.totalorder %v4206_v7, 6 }
0x1397   :  { %v2223_v24 = vsel %vm2117_vm1, 1, %v3622_v47 }
0x1404   :  { %v1811_v25 = vpop.permute.xlu0 %1810 }
0x1405   :  { %v4149_v23 = vadd.f32 %v3437_v8, %v1811_v25 }
0x1407   :  { %v1923_v26 = vpop.permute.xlu1 %1922  ;;  %v4155_v30 = vsel %vm1630_vm13, %v4149_v23, %v4095_v19 }
0x1408   :  { %v1925_v46 = vadd.f32 %v3435_v36, %v1923_v26  ;;  %1939 = vrot.lane.b32.xlu1 %v4155_v30, %s3621_s17 }
0x140a   :  { %v1932_v34 = vrot.slane %v1925_v46, 4 }
0x140c   :  { %1933 = vrot.lane.b32.xlu0 %v1932_v34, %s3621_s17 }
0x1415   :  { %v4160_v37 = vpop.permute.xlu0 %1928 }
0x1416   :  { %vm1930_vm15 = vcmp.eq.s32.totalorder %v4160_v37, 1 }
0x147a   :  { %v1940_v38 = vpop.permute.xlu1 %1939 }
0x147b   :  { %3129 = vmatmul.mubr.msk.f32.vlgmr.msra.gmra.mrb[20].mxu0 %vm331_vm5, %v1940_v38 }
0x147c   :  { %3321 = vmatpush3.bf16.msra.mxu0 %v3784_v11  ;;  %3150 = vmatprep.mubr.msk.f32.mxu0 %vm3619_vm0, %v3620_v1 }
0x147d   :  { %3322 = vmatprep.subr.bf16.mxu0 %v3618_v0 }
0x147e   :  { %v1934_v19 = vpop.permute.xlu0 %1933 }
0x147f   :  { %v4171_v39 = vsel %vm1930_vm15, %v1934_v19, %v4115_v16 }
0x1480   :  { %3324 = vmatpush3.bf16.msra.mxu0 %v3797_v17  ;;  %3140 = vmatmul.mubr.msk.f32.vlgmr.msra.gmra.mrb[18].mxu1 %vm331_vm5, %v4171_v39 }
0x1481   :  { %3327 = vmatpush3.bf16.msra.mxu1 %v3844_v56  ;;  %3161 = vmatprep.mubr.msk.f32.mxu1 %vm3619_vm0, %v3620_v1 }
0x1482   :  { %3328 = vmatprep.subr.bf16.mxu1 %v3618_v0  ;;  %3331 = vmatprep.subr.bf16.mxu0 %v3618_v0 }
0x1483   :  { %3151 = vmatmul.mubr.msk.f32.vlgmr.msra.gmra.mrb[22].mxu0 %vm331_vm5, %v4171_v39 }
0x1484   :  { %3333 = vmatpush3.bf16.msra.mxu0 %v3846_v60  ;;  %3172 = vmatprep.mubr.msk.f32.mxu0 %vm3619_vm0, %v3620_v1 }
0x1485   :  { %3330 = vmatpush3.bf16.msra.mxu1 %v3849_v63  ;;  %3334 = vmatprep.subr.bf16.mxu0 %v3618_v0 }
0x1486   :  { %3337 = vmatprep.subr.bf16.mxu1 %v3618_v0 }
0x1488   :  { %3336 = vmatpush3.bf16.msra.mxu0 %v3853_v2 }
0x1489   :  { %3343 = vmatprep.subr.bf16.mxu0 %v3618_v0 }
0x154e   :  { %v2009_v16 = vpop.f32.mrb[20].mxu0 }
0x154f   :  { %v3130_v40 = vpop.f32.mrb[21].mxu0 }
0x1553   :  { %v2082_v41 = vpop.f32.mrb[18].mxu1 }
0x1554   :  { %v2083_v42 = vadd.f32 %v2082_v41, %v2009_v16  ;;  %v3141_v43 = vpop.f32.mrb[19].mxu1 }
0x1556   :  { %v2086_v44 = vadd.f32 %v3892_v13, %v2083_v42  ;;  %v2185_v45 = vpop.f32.mrb[22].mxu0 }
0x1557   :  { %v2196_v48 = vadd.f32 %v2185_v45, %v3819_v29  ;;  %v3152_v49 = vpop.f32.mrb[23].mxu0  ;;  %v2189_v50 = vadd.f32 %v2185_v45, %v3815_v27 }
0x1558   :  { %2094 = vrot.lane.b32.xlu0 %v2086_v44, %s3624_s23  ;;  %v2790_v51 = vmul.f32 -1.442695, %v2086_v44 }
0x1559   :  { %2198 = vrot.lane.b32.xlu1 %v2196_v48, %s3621_s17  ;;  %v2792_v52 = vmul.f32 -1.442695, %v2189_v50  ;;  %v4258_v50 = vld [vmem:[#allocation10] ss:$0 sm:$0xff] }
0x155a   :  { %3438 = vpow2.f32 %v2790_v51 }
0x155b   :  { %3440 = vpow2.f32 %v2792_v52 }
0x1564   :  { %v3439_v53 = vpop.eup %3438 }
0x1565   :  { %v3441_v54 = vpop.eup %3440  ;;  %v2090_v55 = vadd.f32 1.0, %v3439_v53 }
0x1566   :  { %v2193_v57 = vadd.f32 1.0, %v3441_v54 }
0x1567   :  { %3442 = vrcp.f32 %v2090_v55 }
0x1568   :  { %3444 = vrcp.f32 %v2193_v57 }
0x1571   :  { %v3443_v13 = vpop.eup %3442 }
0x1572   :  { %v3445_v59 = vpop.eup %3444 }
0x15ca   :  { %v2095_v58 = vpop.permute.xlu0 %2094 }
0x15cb   :  { %v2199_v31 = vpop.permute.xlu1 %2198  ;;  %v2097_v35 = vmul.f32 %v3443_v13, %v2095_v58 }
0x15cc   :  { %v2201_v61 = vmul.f32 %v3445_v59, %v2199_v31 }
0x15cd   :  { %2099 = vrot.lane.b32.xlu0 %v2097_v35, %s3621_s17 }
0x15ce   :  { %2203 = vrot.lane.b32.xlu1 %v2201_v61, %s3621_s17 }
0x163f   :  { %v2100_v62 = vpop.permute.xlu0 %2099 }
0x1640   :  { %v2204_v36 = vpop.permute.xlu1 %2203  ;;  %v2102_v8 = vadd.f32 %v2100_v62, %v2086_v44 }
0x1641   :  { %v2206_v28 = vadd.f32 %v2204_v36, %v3815_v27 }
0x1642   :  { %3446 = vtanh.f32 %v2102_v8 }
0x1643   :  { %3448 = vtanh.f32 %v2206_v28 }
0x164c   :  { %v3447_v9 = vpop.eup %3446 }
0x164d   :  { %v3449_v5 = vpop.eup %3448  ;;  %v2104_v12 = vsub.f32 %v4155_v30, %v3447_v9 }
0x164e   :  { %2209 = vrot.lane.b32.xlu1 %v3449_v5, %s3621_s17 }
0x164f   :  { %2106 = vrot.lane.b32.xlu0 %v2104_v12, %s3623_s1 }
0x16c0   :  { %v2210_v4 = vpop.permute.xlu1 %2209 }
0x16c1   :  { %v2212_v22 = vsub.f32 %v4171_v39, %v2210_v4  ;;  %v2107_v33 = vpop.permute.xlu0 %2106 }
0x16c2   :  { %v2109_v27 = vmul.f32 %v3443_v13, %v2107_v33 }
0x16c3   :  { %2214 = vrot.lane.b32.xlu1 %v2212_v22, %s3624_s23 }
0x16c4   :  { %2111 = vrot.lane.b32.xlu0 %v2109_v27, %s3624_s23 }
0x16c7   :  { %2225 = vperm.xlu1 %3371, %v2223_v24  }
0x16cb   :  { %2228 = vrot.lane.b32.xlu1 %v4171_v39, %s3621_s17 }
0x1735   :  { %v2215_v25 = vpop.permute.xlu1 %2214 }
0x1736   :  { %v2217_v26 = vmul.f32 %v3445_v59, %v2215_v25  ;;  %v2112_v46 = vpop.permute.xlu0 %2111 }
0x1737   :  { %v4214_v34 = vadd.f32 %v3447_v9, %v2112_v46 }
0x1738   :  { %2219 = vrot.lane.b32.xlu0 %v2217_v26, %s3624_s23 }
0x1739   :  { %v4221_v38 = vsel %vm1930_vm15, %v4214_v34, %v4155_v30 }
0x173c   :  { %2233 = vrot.lane.b32.xlu0 %v4221_v38, %s3621_s17 }
0x1746   :  { %v4225_v19 = vpop.permute.xlu1 %2225 }
0x1747   :  { %vm2227_vm2 = vcmp.eq.s32.totalorder %v4225_v19, 1 }
0x174a   :  { %v2229_v40 = vpop.permute.xlu1 %2228 }
0x17aa   :  { %v2220_v16 = vpop.permute.xlu0 %2219 }
0x17ab   :  { %v2222_v39 = vadd.f32 %v3449_v5, %v2220_v16 }
0x17ad   :  { %v4230_v41 = vsel %vm2227_vm2, %v2222_v39, %v2229_v40 }
0x17ae   :  { %v2234_v42 = vpop.permute.xlu0 %2233  ;;  %2308 = vrot.lane.b32.xlu1 %v4230_v41, %s3621_s17 }
0x17af   :  { %3162 = vmatmul.mubr.msk.f32.vlgmr.msra.gmra.mrb[20].mxu1 %vm331_vm5, %v2234_v42 }
0x17b0   :  { %3339 = vmatpush3.bf16.msra.mxu1 %v3784_v11  ;;  %3183 = vmatprep.mubr.msk.f32.mxu1 %vm3619_vm0, %v3620_v1 }
0x17b1   :  { %3340 = vmatprep.subr.bf16.mxu1 %v3618_v0 }
0x17b4   :  { %3342 = vmatpush3.bf16.msra.mxu1 %v3797_v17 }
0x17b5   :  { %3349 = vmatprep.subr.bf16.mxu1 %v3618_v0 }
0x1820   :  { %v4241_v30 = vpop.permute.xlu1 %2308 }
0x1821   :  { %3173 = vmatmul.mubr.msk.f32.vlgmr.msra.gmra.mrb[24].mxu0 %vm331_vm5, %v4241_v30  ;;  %3184 = vmatmul.mubr.msk.f32.vlgmr.msra.gmra.mrb[22].mxu1 %vm331_vm5, %v4241_v30 }
0x1822   :  { %3345 = vmatpush3.bf16.msra.mxu0 %v3844_v56  ;;  %3194 = vmatprep.mubr.msk.f32.mxu0 %vm3619_vm0, %v3620_v1 }
0x1823   :  { %3346 = vmatprep.subr.bf16.mxu0 %v3618_v0  ;;  %3351 = vmatpush3.bf16.msra.mxu1 %v3846_v60 }
0x1824   :  { %3352 = vmatprep.subr.bf16.mxu1 %v3618_v0  ;;  %3205 = vmatprep.mubr.msk.f32.mxu1 %vm3619_vm0, %v3620_v1  ;;  %vm2413_vm0 = vcmp.gt.s32.totalorder %v4206_v7, 7 }
0x1825   :  { %v2523_v24 = vsel %vm2413_vm0, 1, %v3622_v47 }
0x1826   :  { %3348 = vmatpush3.bf16.msra.mxu0 %v3849_v63 }
0x1827   :  { %3354 = vmatpush3.bf16.msra.mxu1 %v3853_v2 }
0x1882   :  { %v2303_v11 = vpop.f32.mrb[20].mxu1 }
0x1883   :  { %v3163_v17 = vpop.f32.mrb[21].mxu1 }
0x18f4   :  { %v2378_v43 = vpop.f32.mrb[24].mxu0  ;;  %v2481_v56 = vpop.f32.mrb[22].mxu1 }
0x18f5   :  { %v2379_v44 = vadd.f32 %v2378_v43, %v2303_v11  ;;  %v2495_v45 = vadd.f32 %v2481_v56, %v3819_v29  ;;  %v3174_v48 = vpop.f32.mrb[25].mxu0  ;;  %v3185_v49 = vpop.f32.mrb[23].mxu1  ;;  %v2486_v1 = vrot.slane %v2481_v56, 4 }
0x18f7   :  { %v2382_v0 = vadd.f32 %v4258_v50, %v2379_v44  ;;  %v2497_v60 = vrot.slane %v2495_v45, 4  ;;  %v2488_v63 = vadd.f32 %v2486_v1, %v3823_v32 }
0x18f9   :  { %2498 = vrot.lane.b32.xlu0 %v2497_v60, %s3621_s17  ;;  %2390 = vrot.lane.b32.xlu1 %v2382_v0, %s3624_s23  ;;  %v2795_v2 = vmul.f32 -1.442695, %v2382_v0  ;;  %v2797_v51 = vmul.f32 -1.442695, %v2488_v63 }
0x18fb   :  { %3450 = vpow2.f32 %v2795_v2 }
0x18fc   :  { %3452 = vpow2.f32 %v2797_v51 }
0x1905   :  { %v3451_v52 = vpop.eup %3450 }
0x1906   :  { %v3453_v29 = vpop.eup %3452  ;;  %v2386_v53 = vadd.f32 1.0, %v3451_v52  ;;  %v2116_v52 = vsel %vm1930_vm15, %v4214_v34, 0.0 }
0x1907   :  { %v2492_v54 = vadd.f32 1.0, %v3453_v29 }
0x1908   :  { %3454 = vrcp.f32 %v2386_v53 }
0x1909   :  { %3456 = vrcp.f32 %v2492_v54  ;;  %v1815_v54 = vsel %vm1630_vm13, %v4149_v23, 0.0 }
0x1912   :  { %v3455_v55 = vpop.eup %3454 }
0x1913   :  { %v3457_v57 = vpop.eup %3456 }
0x196b   :  { %v2499_v13 = vpop.permute.xlu0 %2498  ;;  %v2391_v58 = vpop.permute.xlu1 %2390 }
0x196c   :  { %v2501_v59 = vmul.f32 %v3457_v57, %v2499_v13  ;;  %v2393_v31 = vmul.f32 %v3455_v55, %v2391_v58 }
0x196e   :  { %2503 = vrot.lane.b32.xlu0 %v2501_v59, %s3621_s17  ;;  %2395 = vrot.lane.b32.xlu1 %v2393_v31, %s3621_s17 }
0x19e0   :  { %v2504_v35 = vpop.permute.xlu0 %2503  ;;  %v2396_v61 = vpop.permute.xlu1 %2395 }
0x19e1   :  { %v2506_v62 = vadd.f32 %v2504_v35, %v3823_v32  ;;  %v2398_v36 = vadd.f32 %v2396_v61, %v2382_v0 }
0x19e3   :  { %3458 = vtanh.f32 %v2506_v62 }
0x19e4   :  { %3460 = vtanh.f32 %v2398_v36 }
0x19ed   :  { %v3459_v8 = vpop.eup %3458 }
0x19ee   :  { %v3461_v28 = vpop.eup %3460  ;;  %v2509_v9 = vrot.slane %v3459_v8, 4 }
0x19ef   :  { %v2400_v5 = vsub.f32 %v4221_v38, %v3461_v28 }
0x19f0   :  { %v2511_v12 = vsub.f32 %v4230_v41, %v2509_v9 }
0x19f1   :  { %2402 = vrot.lane.b32.xlu1 %v2400_v5, %s3623_s1 }
0x19f2   :  { %v2513_v4 = vrot.slane %v2511_v12, 4 }
0x19f4   :  { %2514 = vrot.lane.b32.xlu0 %v2513_v4, %s3623_s1 }
0x1a63   :  { %v2403_v22 = vpop.permute.xlu1 %2402 }
0x1a64   :  { %v2405_v33 = vmul.f32 %v3455_v55, %v2403_v22 }
0x1a66   :  { %2407 = vrot.lane.b32.xlu1 %v2405_v33, %s3624_s23  ;;  %v2515_v32 = vpop.permute.xlu0 %2514 }
0x1a67   :  { %v2517_v27 = vmul.f32 %v3457_v57, %v2515_v32 }
0x1a69   :  { %2519 = vrot.lane.b32.xlu0 %v2517_v27, %s3624_s23 }
0x1a6d   :  { %2525 = vperm.xlu0 %3370, %v2523_v24  }
0x1ad8   :  { %v2408_v25 = vpop.permute.xlu1 %2407 }
0x1ad9   :  { %v2410_v26 = vadd.f32 %v3461_v28, %v2408_v25 }
0x1adb   :  { %v2520_v46 = vpop.permute.xlu0 %2519  ;;  %v2411_v16 = vsel %vm2227_vm2, %v2410_v26, %v4221_v38  ;;  %v2412_v58 = vsel %vm2227_vm2, %v2410_v26, 0.0 }
0x1adc   :  { %v2522_v39 = vadd.f32 %v3459_v8, %v2520_v46  ;;  %2536 = vrot.lane.b32.xlu0 %v2411_v16, %s3621_s17 }
0x1ade   :  { %v2529_v40 = vrot.slane %v2522_v39, 4 }
0x1ae0   :  { %2530 = vrot.lane.b32.xlu1 %v2529_v40, %s3621_s17 }
0x1aec   :  { %v2526_v41 = vpop.permute.xlu0 %2525 }
0x1aed   :  { %vm2527_vm3 = vcmp.eq.s32.totalorder %v2526_v41, 1 }
0x1b4e   :  { %v2537_v7 = vpop.permute.xlu0 %2536 }
0x1b4f   :  { %3195 = vmatmul.mubr.msk.f32.vlgmr.msra.gmra.mrb[26].mxu0 %vm331_vm5, %v2537_v7 }
0x1b52   :  { %v2531_v47 = vpop.permute.xlu1 %2530 }
0x1b53   :  { %v2534_v42 = vsel %vm2527_vm3, %v2531_v47, %v4241_v30 }
0x1b54   :  { %3206 = vmatmul.mubr.msk.f32.vlgmr.msra.gmra.mrb[24].mxu1 %vm331_vm5, %v2534_v42 }
0x1c22   :  { %v2606_v11 = vpop.f32.mrb[26].mxu0 }
0x1c23   :  { %v3196_v17 = vpop.f32.mrb[27].mxu0 }
0x1c27   :  { %v2679_v38 = vpop.f32.mrb[24].mxu1 }
0x1c28   :  { %v2680_v43 = vadd.f32 %v2679_v38, %v2606_v11  ;;  %v3207_v56 = vpop.f32.mrb[25].mxu1 }
0x1c2a   :  { %v2683_v44 = vadd.f32 %v4258_v50, %v2680_v43  ;;  %v922_v50 = vsel %vm736_vm7, %v3967_v3, 0.0 }
0x1c2c   :  { %2691 = vrot.lane.b32.xlu1 %v2683_v44, %s3624_s23  ;;  %v2800_v45 = vmul.f32 -1.442695, %v2683_v44 }
0x1c2e   :  { %3462 = vpow2.f32 %v2800_v45 }
0x1c38   :  { %v3463_v48 = vpop.eup %3462 }
0x1c39   :  { %v2687_v49 = vadd.f32 1.0, %v3463_v48 }
0x1c3b   :  { %3464 = vrcp.f32 %v2687_v49 }
0x1c45   :  { %v3465_v0 = vpop.eup %3464 }
0x1c9e   :  { %v2692_v60 = vpop.permute.xlu1 %2691 }
0x1c9f   :  { %v2694_v1 = vmul.f32 %v3465_v0, %v2692_v60 }
0x1ca1   :  { %2696 = vrot.lane.b32.xlu0 %v2694_v1, %s3621_s17 }
0x1d13   :  { %v2697_v30 = vpop.permute.xlu0 %2696 }
0x1d14   :  { %v2699_v63 = vadd.f32 %v2697_v30, %v2683_v44 }
0x1d16   :  { %3466 = vtanh.f32 %v2699_v63 }
0x1d20   :  { %v3467_v2 = vpop.eup %3466 }
0x1d21   :  { %v2701_v51 = vsub.f32 %v2411_v16, %v3467_v2 }
0x1d23   :  { %2703 = vrot.lane.b32.xlu1 %v2701_v51, %s3623_s1 }
0x1d27   :  { %2715 = vrot.lane.b32.xlu1 %v922_v50, %s3623_s1 }
0x1d2b   :  { %2727 = vrot.lane.b32.xlu1 %v2116_v52, %s3623_s1 }
0x1d95   :  { %v2704_v29 = vpop.permute.xlu1 %2703 }
0x1d96   :  { %v2706_v53 = vmul.f32 %v3465_v0, %v2704_v29 }
0x1d98   :  { %2708 = vrot.lane.b32.xlu0 %v2706_v53, %s3624_s23 }
0x1d99   :  { %v2716_v55 = vpop.permute.xlu1 %2715 }
0x1d9a   :  { %v2734_v21 = vsel %vm331_vm5, %v3917_v14, %v2716_v55 }
0x1d9b   :  { %v2736_v59 = vsel %vm2735_vm4, %v2734_v21, %v1218_v18 }
0x1d9c   :  { %2723 = vrot.lane.b32.xlu0 %v1815_v54, %s3621_s17 }
0x1d9d   :  { %v2728_v13 = vpop.permute.xlu1 %2727 }
0x1da0   :  { %2719 = vrot.lane.b32.xlu0 %v1519_v10, %s3624_s23 }
0x1e0a   :  { %v2709_v3 = vpop.permute.xlu0 %2708 }
0x1e0b   :  { %v2711_v37 = vadd.f32 %v3467_v2, %v2709_v3 }
0x1e0d   :  { %v2712_v34 = vsel %vm2527_vm3, %v2711_v37, 0.0 }
0x1e0e   :  { %2731 = vrot.lane.b32.xlu1 %v2712_v34, %s3624_s23  ;;  %v2724_v57 = vpop.permute.xlu0 %2723 }
0x1e0f   :  { %v2739_v23 = vsel %vm331_vm5, %v2724_v57, %v2728_v13 }
0x1e10   :  { %v2740_v31 = vsel %vm2735_vm4, %v2739_v23, %v2412_v58 }
0x1e12   :  { %v2720_v20 = vpop.permute.xlu0 %2719 }
0x1e13   :  { %v2738_v61 = vsel %vm2737_vm6, %v2736_v59, %v2720_v20 }
0x1e80   :  { %v2732_v35 = vpop.permute.xlu1 %2731 }
0x1e81   :  { %v2741_v62 = vsel %vm2737_vm6, %v2740_v31, %v2732_v35 }
0x1e82   :  { %v2744_v36 = vcombine.low %v2738_v61, %v2741_v62 }
0x1e84   :  { %2746 = vst [vmem:[%s4329_s11] sm:$0xff] %v2744_v36 }
0x1e85   :  { %2751 = vsyncpa [#allocation3], 1 }
0x1e86   :  { %2752 = vsyncpa [#allocation5], 1 }
0x1e87   :  { %2753 = vsyncpa [#allocation8], 1 }
0x1e88   :  { %2754 = vsyncpa [#allocation11], 1 }

</bundles_post_ra>
